<compile_context>
chip_gen: v7x
topology: tpu7x:2x2x1
jax: 0.10.0
libtpu: 0.0.40
codegen_flags: <defaults>
</compile_context>

<pallas_src>
import functools

import jax
import jax.numpy as jnp
from jax import lax
from jax.experimental import pallas as pl
from jax.experimental.pallas import tpu as pltpu

BN_EPS = 1e-5
C_PAD = 8           # raw 3-d point features zero-padded to 8 lanes host-side


# --------------------------- host-side slab packing ---------------------------


def _pack_cols(entries, n_rows, lane_align=128):
    """Pack [(name, (rows, cols) array)] into one (n_rows, total_cols) slab.

    Rows are zero-padded to n_rows; returns (slab, {name: (col_off, rows, cols)})
    with static Python-int offsets for zero-cost in-kernel ref slicing."""
    offs, pieces, c0 = {}, [], 0
    for name, a in entries:
        r, c = a.shape
        offs[name] = (c0, r, c)
        pieces.append(jnp.pad(a, ((0, n_rows - r), (0, 0))))
        c0 += c
    slab = jnp.concatenate(pieces, axis=1)
    pad = (-c0) % lane_align
    if pad:
        slab = jnp.pad(slab, ((0, 0), (0, pad)))
    return slab, offs


# ------------------------------- fused kernel --------------------------------


def _make_kernel(w_offs, b_offs, feat_k):
    f32 = jnp.float32

    def kernel(x_ref, w_ref, b_ref, logits_ref, m_in_ref, m_feat_ref):
        # ---- static-offset slab views (zero-cost; no per-layer DMA) ----
        def w(name):
            c0, r, c = w_offs[name]
            return w_ref[0:r, c0:c0 + c]

        def bias(name):
            c0, _, c = b_offs[name]
            return b_ref[:, c0:c0 + c]

        def mm(a, bm):
            return jnp.dot(a, bm, preferred_element_type=f32)

        def fc(a, name, relu=True):
            y = mm(a, w(name)) + bias(name)
            return jnp.maximum(y, 0.0) if relu else y

        def build_transform(t_row, k, nrows):
            # reshape(t_row, (k, k)) + I_k, zero-padded to (nrows, k), built as a
            # VALUE via iota masks + sublane broadcasts (no per-row ref stores,
            # no VMEM store->load round trip).
            row_id = lax.broadcasted_iota(jnp.int32, (nrows, k), 0)
            col_id = lax.broadcasted_iota(jnp.int32, (nrows, k), 1)
            m = (row_id == col_id).astype(f32)          # identity (padded rows = 0)
            for i in range(k):
                ri = jnp.broadcast_to(t_row[:, k * i:k * (i + 1)], (nrows, k))
                m = m + jnp.where(row_id == i, ri, 0.0)
            return m

        x = x_ref[...]                                   # (N, C_PAD), cols 3.. are 0

        # ---------------- input TNet ----------------
        h = fc(x, "it_c1")                               # (N, 8)
        h = fc(h, "it_c2")                               # (N, 16)
        g = jnp.max(h, axis=0, keepdims=True)            # global max pool -> (1, 16)
        g = fc(g, "it_f1")                               # (1, 16)
        g = fc(g, "it_f2")                               # (1, 8)
        t = fc(g, "it_t", relu=False)                    # (1, 9)
        m_in = build_transform(t, 3, C_PAD)              # (C_PAD, 3), rows 3.. zero
        m_in_ref[...] = m_in[0:3, :]                     # single store

        # ---- input-transform bmm folded into in2feat:  relu((x@M)@W+b) == relu(x@(M@W)+b)
        w_eff = mm(m_in, w("i2f"))                       # (C_PAD, feat_k)
        h1 = jnp.maximum(mm(x, w_eff) + bias("i2f"), 0.0)  # (N, feat_k)

        # ---------------- feature TNet ----------------
        h = fc(h1, "ft_c1")                              # (N, 8)
        h = fc(h, "ft_c2")                               # (N, 16)
        g = jnp.max(h, axis=0, keepdims=True)            # (1, 16)
        g = fc(g, "ft_f1")                               # (1, 16)
        g = fc(g, "ft_f2")                               # (1, 8)
        t = fc(g, "ft_t", relu=False)                    # (1, feat_k*feat_k)
        m_feat = build_transform(t, feat_k, feat_k)      # (feat_k, feat_k)
        m_feat_ref[...] = m_feat                         # single store

        # ---- feature transform; "local features" never leave vregs ----
        local = mm(h1, m_feat)                           # (N, feat_k)

        # ---------------- Transform top convs + global max pool ----------------
        t1 = fc(local, "top1")                           # (N, 16)
        t2 = fc(t1, "top2", relu=False)                  # (N, 32)  add_top_relu=False
        gfeat = jnp.max(t2, axis=0, keepdims=True)       # (1, 32)
        gterm = mm(gfeat, w("pn1_g"))                    # (1, 128)

        # ---- PointNet top: concat([local, global]) fused into a split matmul;
        #      gterm (1,128) broadcasts over sublanes in the add (no g_rows slab). ----
        p1 = jnp.maximum(mm(local, w("pn1_l")) + gterm + bias("pn1"), 0.0)   # (N, 128)
        p2 = fc(p1, "pn2")                               # (N, 64)

        # ---- classifier, emitted lane-dense as a (1, N) row (cls weight stored
        #      transposed in the slab; contraction on the shared channel axis). ----
        logits_ref[...] = (
            jnp.einsum("ic,nc->in", w("cls_t"), p2, preferred_element_type=f32)
            + bias("cls"))

    return kernel


# ------------------------------ pallas_call wrapper ------------------------------


def pointnet_forward(x_ncw, params, feat_k=8):
    """PointNet forward.  x_ncw: (B, 3, N) (PyTorch NCW layout).
    Returns (logits (B, N, 1), input_transform (B, 3, 3), feature_transform (B, k, k))."""
    B, C0, N = x_ncw.shape
    tr = params["transform"]
    it, ft = tr["input_tnet"], tr["feat_tnet"]

    def row(v):
        return v.reshape(1, -1)

    # pn1 weight split: rows [:feat_k] act on the local features (the reference
    # concatenates [local, global] with local first); rows [feat_k:] act on the
    # broadcast global feature.
    pn1_wl = params["pn1_w"][:feat_k]
    pn1_wg = params["pn1_w"][feat_k:]

    # ---- pack all weights into ONE (128, C) slab, all biases into ONE (1, C) row ----
    w_entries = [
        ("it_c1", jnp.pad(it["conv1_w"], ((0, C_PAD - C0), (0, 0)))),
        ("it_c2", it["conv2_w"]),
        ("it_f1", it["fc1_w"]), ("it_f2", it["fc2_w"]), ("it_t", it["t_w"]),
        ("i2f", tr["in2feat_w"]),
        ("ft_c1", ft["conv1_w"]), ("ft_c2", ft["conv2_w"]),
        ("ft_f1", ft["fc1_w"]), ("ft_f2", ft["fc2_w"]), ("ft_t", ft["t_w"]),
        ("top1", tr["top1_w"]), ("top2", tr["top2_w"]),
        ("pn1_l", pn1_wl), ("pn1_g", pn1_wg),
        ("pn2", params["pn2_w"]),
        ("cls_t", params["cls_w"].T),                    # stored transposed: (1, 64)
    ]
    n_rows = max(a.shape[0] for _, a in w_entries)       # 128 (pn2)
    w_slab, w_offs = _pack_cols(w_entries, n_rows)

    b_entries = [
        ("it_c1", row(it["conv1_b"])), ("it_c2", row(it["conv2_b"])),
        ("it_f1", row(it["fc1_b"])), ("it_f2", row(it["fc2_b"])),
        ("it_t", row(it["t_b"])),
        ("i2f", row(tr["in2feat_b"])),
        ("ft_c1", row(ft["conv1_b"])), ("ft_c2", row(ft["conv2_b"])),
        ("ft_f1", row(ft["fc1_b"])), ("ft_f2", row(ft["fc2_b"])),
        ("ft_t", row(ft["t_b"])),
        ("top1", row(tr["top1_b"])), ("top2", row(tr["top2_b"])),
        ("pn1", row(params["pn1_b"])), ("pn2", row(params["pn2_b"])),
        ("cls", row(params["cls_b"])),
    ]
    b_slab, b_offs = _pack_cols(b_entries, 1)

    # NCW -> (B, N, C_PAD): one tiny relayout + zero-pad of the raw points.
    x_bnc = jnp.transpose(x_ncw, (0, 2, 1))
    x_pad = jnp.pad(x_bnc, ((0, 0), (0, 0), (0, C_PAD - C0)))

    kernel = _make_kernel(w_offs, b_offs, feat_k)

    # Advisory cost hint so XLA can overlap this tiny kernel with surrounding ops.
    flops = 2 * B * N * sum(r * c for (_, r, c) in w_offs.values())
    bytes_accessed = 4 * (x_pad.size + w_slab.size + b_slab.size
                          + B * (N + 9 + feat_k * feat_k))

    logits, m_in, m_feat = pl.pallas_call(
        kernel,
        out_shape=(
            jax.ShapeDtypeStruct((B, 1, N), jnp.float32),            # lane-dense logits
            jax.ShapeDtypeStruct((B, 3, 3), jnp.float32),            # input transform
            jax.ShapeDtypeStruct((B, feat_k, feat_k), jnp.float32),  # feature transform
        ),
        grid=(B,),                                                   # batch grid axis
        in_specs=[
            pl.BlockSpec((None, N, C_PAD), lambda b: (b, 0, 0)),     # per-batch points
            pl.BlockSpec(w_slab.shape, lambda b: (0, 0)),            # weight slab (1 DMA)
            pl.BlockSpec(b_slab.shape, lambda b: (0, 0)),            # bias slab  (1 DMA)
        ],
        out_specs=(
            pl.BlockSpec((None, 1, N), lambda b: (b, 0, 0)),
            pl.BlockSpec((None, 3, 3), lambda b: (b, 0, 0)),
            pl.BlockSpec((None, feat_k, feat_k), lambda b: (b, 0, 0)),
        ),
        compiler_params=pltpu.CompilerParams(
            dimension_semantics=("parallel",)),                      # 2 TCs on v7x
        cost_estimate=pl.CostEstimate(
            flops=flops, transcendentals=0, bytes_accessed=bytes_accessed),
    )(x_pad, w_slab, b_slab)

    # (B, 1, N) -> (B, N, 1): matches PyTorch's output.transpose(2, 1).
    return logits.reshape(B, N, 1), m_in, m_feat


# ---------------------- deterministic parameter init -----------------------


def _conv_bn_params(key, cin, cout, with_bn=True):
    k1, k2, k3, k4 = jax.random.split(key, 4)
    w = jax.random.normal(k1, (cin, cout), jnp.float32) / jnp.sqrt(float(cin))
    b = 0.02 * jax.random.normal(k2, (cout,), jnp.float32)
    if with_bn:
        gamma = 1.0 + 0.05 * jax.random.normal(k3, (cout,), jnp.float32)
        beta = 0.05 * jax.random.normal(k4, (cout,), jnp.float32)
        running_mean = jnp.zeros((cout,), jnp.float32)
        running_var = jnp.ones((cout,), jnp.float32)
        # TODO(synk): training-mode BatchNorm (batch statistics) not implemented;
        #             BN folded in eval mode using running stats.
        scale = gamma / jnp.sqrt(running_var + BN_EPS)
        w = w * scale[None, :]
        b = b * scale + beta - running_mean * scale
    return w, b


def init_tnet_params(key, k):
    ks = jax.random.split(key, 5)
    c1w, c1b = _conv_bn_params(ks[0], k, 8)
    c2w, c2b = _conv_bn_params(ks[1], 8, 16)
    f1w, f1b = _conv_bn_params(ks[2], 16, 16)
    f2w, f2b = _conv_bn_params(ks[3], 16, 8)
    tw, tb = _conv_bn_params(ks[4], 8, k * k, with_bn=False)
    return dict(conv1_w=c1w, conv1_b=c1b, conv2_w=c2w, conv2_b=c2b,
                fc1_w=f1w, fc1_b=f1b, fc2_w=f2w, fc2_b=f2b, t_w=tw, t_b=tb)


def init_params(key, feat_k=8):
    ks = jax.random.split(key, 8)
    in2f_w, in2f_b = _conv_bn_params(ks[2], 3, feat_k)
    top1_w, top1_b = _conv_bn_params(ks[3], feat_k, 16)
    top2_w, top2_b = _conv_bn_params(ks[4], 16, 32)
    pn1_w, pn1_b = _conv_bn_params(ks[5], 32 + feat_k, 128)
    pn2_w, pn2_b = _conv_bn_params(ks[6], 128, 64)
    cls_w, cls_b = _conv_bn_params(ks[7], 64, 1, with_bn=False)
    return {
        "transform": {
            "input_tnet": init_tnet_params(ks[0], 3),
            "feat_tnet": init_tnet_params(ks[1], feat_k),
            "in2feat_w": in2f_w, "in2feat_b": in2f_b,
            "top1_w": top1_w, "top1_b": top1_b,
            "top2_w": top2_w, "top2_b": top2_b,
        },
        "pn1_w": pn1_w, "pn1_b": pn1_b,
        "pn2_w": pn2_w, "pn2_b": pn2_b,
        "cls_w": cls_w, "cls_b": cls_b,
    }


# ---------------------------------- main -----------------------------------

if __name__ == "__main__":
    B, C_IN, N = 2, 3, 64   # batch, input point-feature dim, number of points
    FEAT_K = 8              # feature-transform TNet k

    key = jax.random.PRNGKey(0)
    k_inp, k_par = jax.random.split(key)
    x_ncw = jax.random.normal(k_inp, (B, C_IN, N), jnp.float32)  # PyTorch NCW input
    params = init_params(k_par, feat_k=FEAT_K)

    fwd = jax.jit(functools.partial(pointnet_forward, feat_k=FEAT_K))
    out, m_in, m_feat = fwd(x_ncw, params)
    jax.block_until_ready((out, m_in, m_feat))

    assert out.shape == (B, N, 1), out.shape
    assert m_in.shape == (B, 3, 3), m_in.shape
    assert m_feat.shape == (B, FEAT_K, FEAT_K), m_feat.shape
    assert jnp.all(jnp.isfinite(out))
    print("KERNEL_OK")
</pallas_src>

<mosaic_0001>
module attributes {stable_mosaic.version = 11 : i64} {
  func.func @kernel(%arg0: i32, %arg1: memref<1x64x8xf32, #tpu.memory_space<vmem>>, %arg2: memref<128x640xf32, #tpu.memory_space<vmem>>, %arg3: memref<1x512xf32, #tpu.memory_space<vmem>>, %arg4: memref<1x1x64xf32, #tpu.memory_space<vmem>>, %arg5: memref<1x3x3xf32, #tpu.memory_space<vmem>>, %arg6: memref<1x8x8xf32, #tpu.memory_space<vmem>>) attributes {dimension_semantics = [#tpu.dimension_semantics<parallel>], iteration_bounds = array<i64: 2>, scalar_prefetch = 0 : i64, scratch_operands = 0 : i64, tpu.core_type = #tpu.core_type<tc>, window_params = [{transform_indices = @transform_0, window_bounds = array<i64: 1, 64, 8>}, {pipeline_mode = #tpu.pipeline_mode<synchronous>, transform_indices = @transform_1, window_bounds = array<i64: 128, 640>}, {pipeline_mode = #tpu.pipeline_mode<synchronous>, transform_indices = @transform_2, window_bounds = array<i64: 1, 512>}, {transform_indices = @transform_3, window_bounds = array<i64: 1, 1, 64>}, {transform_indices = @transform_4, window_bounds = array<i64: 1, 3, 3>}, {transform_indices = @transform_5, window_bounds = array<i64: 1, 8, 8>}]} {
    %c0 = arith.constant 0 : index
    %c0_0 = arith.constant 0 : index
    %c0_1 = arith.constant 0 : index
    %0 = vector.load %arg1[%c0, %c0_0, %c0_1] : memref<1x64x8xf32, #tpu.memory_space<vmem>>, vector<1x64x8xf32>
    %1 = vector.shape_cast %0 : vector<1x64x8xf32> to vector<64x8xf32>
    %c0_2 = arith.constant 0 : index
    %c0_3 = arith.constant 0 : index
    %2 = vector.load %arg2[%c0_2, %c0_3] : memref<128x640xf32, #tpu.memory_space<vmem>>, vector<8x8xf32>
    %cst = arith.constant dense<0.000000e+00> : vector<64x8xf32>
    %3 = tpu.matmul %1, %2, %cst {dimension_numbers = #tpu.dot_dimension_numbers<[1], [0], [0], [1], [0, 0, 1, 1], [], []>} : vector<64x8xf32>, vector<8x8xf32>, vector<64x8xf32> -> vector<64x8xf32>
    %c0_4 = arith.constant 0 : index
    %c0_5 = arith.constant 0 : index
    %4 = vector.load %arg3[%c0_4, %c0_5] : memref<1x512xf32, #tpu.memory_space<vmem>>, vector<1x8xf32>
    %5 = vector.broadcast %4 : vector<1x8xf32> to vector<64x8xf32>
    %6 = arith.addf %3, %5 : vector<64x8xf32>
    %cst_6 = arith.constant 0.000000e+00 : f32
    %7 = vector.broadcast %cst_6 : f32 to vector<64x8xf32>
    %8 = arith.maximumf %6, %7 : vector<64x8xf32>
    %c0_7 = arith.constant 0 : index
    %c8 = arith.constant 8 : index
    %9 = vector.load %arg2[%c0_7, %c8] : memref<128x640xf32, #tpu.memory_space<vmem>>, vector<8x16xf32>
    %cst_8 = arith.constant dense<0.000000e+00> : vector<64x16xf32>
    %10 = tpu.matmul %8, %9, %cst_8 {dimension_numbers = #tpu.dot_dimension_numbers<[1], [0], [0], [1], [0, 0, 1, 1], [], []>} : vector<64x8xf32>, vector<8x16xf32>, vector<64x16xf32> -> vector<64x16xf32>
    %c0_9 = arith.constant 0 : index
    %c8_10 = arith.constant 8 : index
    %11 = vector.load %arg3[%c0_9, %c8_10] : memref<1x512xf32, #tpu.memory_space<vmem>>, vector<1x16xf32>
    %12 = vector.broadcast %11 : vector<1x16xf32> to vector<64x16xf32>
    %13 = arith.addf %10, %12 : vector<64x16xf32>
    %cst_11 = arith.constant 0.000000e+00 : f32
    %14 = vector.broadcast %cst_11 : f32 to vector<64x16xf32>
    %15 = arith.maximumf %13, %14 : vector<64x16xf32>
    %cst_12 = arith.constant dense<0xFF800000> : vector<16xf32>
    %16 = vector.multi_reduction <maximumf>, %15, %cst_12 [0] : vector<64x16xf32> to vector<16xf32>
    %17 = vector.shape_cast %16 : vector<16xf32> to vector<1x16xf32>
    %c0_13 = arith.constant 0 : index
    %c24 = arith.constant 24 : index
    %18 = vector.load %arg2[%c0_13, %c24] : memref<128x640xf32, #tpu.memory_space<vmem>>, vector<16x16xf32>
    %cst_14 = arith.constant dense<0.000000e+00> : vector<1x16xf32>
    %19 = tpu.matmul %17, %18, %cst_14 {dimension_numbers = #tpu.dot_dimension_numbers<[1], [0], [0], [1], [0, 0, 1, 1], [], []>} : vector<1x16xf32>, vector<16x16xf32>, vector<1x16xf32> -> vector<1x16xf32>
    %c0_15 = arith.constant 0 : index
    %c24_16 = arith.constant 24 : index
    %20 = vector.load %arg3[%c0_15, %c24_16] : memref<1x512xf32, #tpu.memory_space<vmem>>, vector<1x16xf32>
    %21 = arith.addf %19, %20 : vector<1x16xf32>
    %cst_17 = arith.constant 0.000000e+00 : f32
    %22 = vector.broadcast %cst_17 : f32 to vector<1x16xf32>
    %23 = arith.maximumf %21, %22 : vector<1x16xf32>
    %c0_18 = arith.constant 0 : index
    %c40 = arith.constant 40 : index
    %24 = vector.load %arg2[%c0_18, %c40] : memref<128x640xf32, #tpu.memory_space<vmem>>, vector<16x8xf32>
    %cst_19 = arith.constant dense<0.000000e+00> : vector<1x8xf32>
    %25 = tpu.matmul %23, %24, %cst_19 {dimension_numbers = #tpu.dot_dimension_numbers<[1], [0], [0], [1], [0, 0, 1, 1], [], []>} : vector<1x16xf32>, vector<16x8xf32>, vector<1x8xf32> -> vector<1x8xf32>
    %c0_20 = arith.constant 0 : index
    %c40_21 = arith.constant 40 : index
    %26 = vector.load %arg3[%c0_20, %c40_21] : memref<1x512xf32, #tpu.memory_space<vmem>>, vector<1x8xf32>
    %27 = arith.addf %25, %26 : vector<1x8xf32>
    %cst_22 = arith.constant 0.000000e+00 : f32
    %28 = vector.broadcast %cst_22 : f32 to vector<1x8xf32>
    %29 = arith.maximumf %27, %28 : vector<1x8xf32>
    %c0_23 = arith.constant 0 : index
    %c48 = arith.constant 48 : index
    %30 = vector.load %arg2[%c0_23, %c48] : memref<128x640xf32, #tpu.memory_space<vmem>>, vector<8x9xf32>
    %cst_24 = arith.constant dense<0.000000e+00> : vector<1x9xf32>
    %31 = tpu.matmul %29, %30, %cst_24 {dimension_numbers = #tpu.dot_dimension_numbers<[1], [0], [0], [1], [0, 0, 1, 1], [], []>} : vector<1x8xf32>, vector<8x9xf32>, vector<1x9xf32> -> vector<1x9xf32>
    %c0_25 = arith.constant 0 : index
    %c48_26 = arith.constant 48 : index
    %32 = vector.load %arg3[%c0_25, %c48_26] : memref<1x512xf32, #tpu.memory_space<vmem>>, vector<1x9xf32>
    %33 = arith.addf %31, %32 : vector<1x9xf32>
    %34 = tpu.iota {dimensions = array<i32: 0>} : vector<8x3xi32>
    %35 = tpu.iota {dimensions = array<i32: 1>} : vector<8x3xi32>
    %36 = arith.cmpi eq, %34, %35 : vector<8x3xi32>
    %37 = arith.extui %36 : vector<8x3xi1> to vector<8x3xi32>
    %38 = arith.sitofp %37 : vector<8x3xi32> to vector<8x3xf32>
    %39 = vector.extract_strided_slice %33 {offsets = [0, 0], sizes = [1, 3], strides = [1, 1]} : vector<1x9xf32> to vector<1x3xf32>
    %40 = vector.shape_cast %39 : vector<1x3xf32> to vector<1x3xf32>
    %41 = vector.broadcast %40 : vector<1x3xf32> to vector<8x3xf32>
    %c0_i32 = arith.constant 0 : i32
    %42 = vector.broadcast %c0_i32 : i32 to vector<8x3xi32>
    %43 = arith.cmpi eq, %34, %42 : vector<8x3xi32>
    %cst_27 = arith.constant 0.000000e+00 : f32
    %44 = vector.broadcast %cst_27 : f32 to vector<8x3xf32>
    %45 = arith.select %43, %41, %44 : vector<8x3xi1>, vector<8x3xf32>
    %46 = arith.addf %38, %45 : vector<8x3xf32>
    %47 = vector.extract_strided_slice %33 {offsets = [0, 3], sizes = [1, 3], strides = [1, 1]} : vector<1x9xf32> to vector<1x3xf32>
    %48 = vector.shape_cast %47 : vector<1x3xf32> to vector<1x3xf32>
    %49 = vector.broadcast %48 : vector<1x3xf32> to vector<8x3xf32>
    %c1_i32 = arith.constant 1 : i32
    %50 = vector.broadcast %c1_i32 : i32 to vector<8x3xi32>
    %51 = arith.cmpi eq, %34, %50 : vector<8x3xi32>
    %cst_28 = arith.constant 0.000000e+00 : f32
    %52 = vector.broadcast %cst_28 : f32 to vector<8x3xf32>
    %53 = arith.select %51, %49, %52 : vector<8x3xi1>, vector<8x3xf32>
    %54 = arith.addf %46, %53 : vector<8x3xf32>
    %55 = vector.extract_strided_slice %33 {offsets = [0, 6], sizes = [1, 3], strides = [1, 1]} : vector<1x9xf32> to vector<1x3xf32>
    %56 = vector.shape_cast %55 : vector<1x3xf32> to vector<1x3xf32>
    %57 = vector.broadcast %56 : vector<1x3xf32> to vector<8x3xf32>
    %c2_i32 = arith.constant 2 : i32
    %58 = vector.broadcast %c2_i32 : i32 to vector<8x3xi32>
    %59 = arith.cmpi eq, %34, %58 : vector<8x3xi32>
    %cst_29 = arith.constant 0.000000e+00 : f32
    %60 = vector.broadcast %cst_29 : f32 to vector<8x3xf32>
    %61 = arith.select %59, %57, %60 : vector<8x3xi1>, vector<8x3xf32>
    %62 = arith.addf %54, %61 : vector<8x3xf32>
    %63 = vector.extract_strided_slice %62 {offsets = [0, 0], sizes = [3, 3], strides = [1, 1]} : vector<8x3xf32> to vector<3x3xf32>
    %c0_30 = arith.constant 0 : index
    %c0_31 = arith.constant 0 : index
    %c0_32 = arith.constant 0 : index
    %64 = vector.load %arg5[%c0_30, %c0_31, %c0_32] : memref<1x3x3xf32, #tpu.memory_space<vmem>>, vector<1x3x3xf32>
    %65 = vector.shape_cast %64 : vector<1x3x3xf32> to vector<3x3xf32>
    %66 = vector.shape_cast %63 : vector<3x3xf32> to vector<1x3x3xf32>
    tpu.vector_store %arg5[%c0_30, %c0_31, %c0_32], %66 {strides = array<i32>} : memref<1x3x3xf32, #tpu.memory_space<vmem>>, vector<1x3x3xf32>,
    %c0_33 = arith.constant 0 : index
    %c57 = arith.constant 57 : index
    %67 = vector.load %arg2[%c0_33, %c57] : memref<128x640xf32, #tpu.memory_space<vmem>>, vector<3x8xf32>
    %cst_34 = arith.constant dense<0.000000e+00> : vector<8x8xf32>
    %68 = tpu.matmul %62, %67, %cst_34 {dimension_numbers = #tpu.dot_dimension_numbers<[1], [0], [0], [1], [0, 0, 1, 1], [], []>} : vector<8x3xf32>, vector<3x8xf32>, vector<8x8xf32> -> vector<8x8xf32>
    %cst_35 = arith.constant dense<0.000000e+00> : vector<64x8xf32>
    %69 = tpu.matmul %1, %68, %cst_35 {dimension_numbers = #tpu.dot_dimension_numbers<[1], [0], [0], [1], [0, 0, 1, 1], [], []>} : vector<64x8xf32>, vector<8x8xf32>, vector<64x8xf32> -> vector<64x8xf32>
    %c0_36 = arith.constant 0 : index
    %c57_37 = arith.constant 57 : index
    %70 = vector.load %arg3[%c0_36, %c57_37] : memref<1x512xf32, #tpu.memory_space<vmem>>, vector<1x8xf32>
    %71 = vector.broadcast %70 : vector<1x8xf32> to vector<64x8xf32>
    %72 = arith.addf %69, %71 : vector<64x8xf32>
    %cst_38 = arith.constant 0.000000e+00 : f32
    %73 = vector.broadcast %cst_38 : f32 to vector<64x8xf32>
    %74 = arith.maximumf %72, %73 : vector<64x8xf32>
    %c0_39 = arith.constant 0 : index
    %c65 = arith.constant 65 : index
    %75 = vector.load %arg2[%c0_39, %c65] : memref<128x640xf32, #tpu.memory_space<vmem>>, vector<8x8xf32>
    %cst_40 = arith.constant dense<0.000000e+00> : vector<64x8xf32>
    %76 = tpu.matmul %74, %75, %cst_40 {dimension_numbers = #tpu.dot_dimension_numbers<[1], [0], [0], [1], [0, 0, 1, 1], [], []>} : vector<64x8xf32>, vector<8x8xf32>, vector<64x8xf32> -> vector<64x8xf32>
    %c0_41 = arith.constant 0 : index
    %c65_42 = arith.constant 65 : index
    %77 = vector.load %arg3[%c0_41, %c65_42] : memref<1x512xf32, #tpu.memory_space<vmem>>, vector<1x8xf32>
    %78 = vector.broadcast %77 : vector<1x8xf32> to vector<64x8xf32>
    %79 = arith.addf %76, %78 : vector<64x8xf32>
    %cst_43 = arith.constant 0.000000e+00 : f32
    %80 = vector.broadcast %cst_43 : f32 to vector<64x8xf32>
    %81 = arith.maximumf %79, %80 : vector<64x8xf32>
    %c0_44 = arith.constant 0 : index
    %c73 = arith.constant 73 : index
    %82 = vector.load %arg2[%c0_44, %c73] : memref<128x640xf32, #tpu.memory_space<vmem>>, vector<8x16xf32>
    %cst_45 = arith.constant dense<0.000000e+00> : vector<64x16xf32>
    %83 = tpu.matmul %81, %82, %cst_45 {dimension_numbers = #tpu.dot_dimension_numbers<[1], [0], [0], [1], [0, 0, 1, 1], [], []>} : vector<64x8xf32>, vector<8x16xf32>, vector<64x16xf32> -> vector<64x16xf32>
    %c0_46 = arith.constant 0 : index
    %c73_47 = arith.constant 73 : index
    %84 = vector.load %arg3[%c0_46, %c73_47] : memref<1x512xf32, #tpu.memory_space<vmem>>, vector<1x16xf32>
    %85 = vector.broadcast %84 : vector<1x16xf32> to vector<64x16xf32>
    %86 = arith.addf %83, %85 : vector<64x16xf32>
    %cst_48 = arith.constant 0.000000e+00 : f32
    %87 = vector.broadcast %cst_48 : f32 to vector<64x16xf32>
    %88 = arith.maximumf %86, %87 : vector<64x16xf32>
    %cst_49 = arith.constant dense<0xFF800000> : vector<16xf32>
    %89 = vector.multi_reduction <maximumf>, %88, %cst_49 [0] : vector<64x16xf32> to vector<16xf32>
    %90 = vector.shape_cast %89 : vector<16xf32> to vector<1x16xf32>
    %c0_50 = arith.constant 0 : index
    %c89 = arith.constant 89 : index
    %91 = vector.load %arg2[%c0_50, %c89] : memref<128x640xf32, #tpu.memory_space<vmem>>, vector<16x16xf32>
    %cst_51 = arith.constant dense<0.000000e+00> : vector<1x16xf32>
    %92 = tpu.matmul %90, %91, %cst_51 {dimension_numbers = #tpu.dot_dimension_numbers<[1], [0], [0], [1], [0, 0, 1, 1], [], []>} : vector<1x16xf32>, vector<16x16xf32>, vector<1x16xf32> -> vector<1x16xf32>
    %c0_52 = arith.constant 0 : index
    %c89_53 = arith.constant 89 : index
    %93 = vector.load %arg3[%c0_52, %c89_53] : memref<1x512xf32, #tpu.memory_space<vmem>>, vector<1x16xf32>
    %94 = arith.addf %92, %93 : vector<1x16xf32>
    %cst_54 = arith.constant 0.000000e+00 : f32
    %95 = vector.broadcast %cst_54 : f32 to vector<1x16xf32>
    %96 = arith.maximumf %94, %95 : vector<1x16xf32>
    %c0_55 = arith.constant 0 : index
    %c105 = arith.constant 105 : index
    %97 = vector.load %arg2[%c0_55, %c105] : memref<128x640xf32, #tpu.memory_space<vmem>>, vector<16x8xf32>
    %cst_56 = arith.constant dense<0.000000e+00> : vector<1x8xf32>
    %98 = tpu.matmul %96, %97, %cst_56 {dimension_numbers = #tpu.dot_dimension_numbers<[1], [0], [0], [1], [0, 0, 1, 1], [], []>} : vector<1x16xf32>, vector<16x8xf32>, vector<1x8xf32> -> vector<1x8xf32>
    %c0_57 = arith.constant 0 : index
    %c105_58 = arith.constant 105 : index
    %99 = vector.load %arg3[%c0_57, %c105_58] : memref<1x512xf32, #tpu.memory_space<vmem>>, vector<1x8xf32>
    %100 = arith.addf %98, %99 : vector<1x8xf32>
    %cst_59 = arith.constant 0.000000e+00 : f32
    %101 = vector.broadcast %cst_59 : f32 to vector<1x8xf32>
    %102 = arith.maximumf %100, %101 : vector<1x8xf32>
    %c0_60 = arith.constant 0 : index
    %c113 = arith.constant 113 : index
    %103 = vector.load %arg2[%c0_60, %c113] : memref<128x640xf32, #tpu.memory_space<vmem>>, vector<8x64xf32>
    %cst_61 = arith.constant dense<0.000000e+00> : vector<1x64xf32>
    %104 = tpu.matmul %102, %103, %cst_61 {dimension_numbers = #tpu.dot_dimension_numbers<[1], [0], [0], [1], [0, 0, 1, 1], [], []>} : vector<1x8xf32>, vector<8x64xf32>, vector<1x64xf32> -> vector<1x64xf32>
    %c0_62 = arith.constant 0 : index
    %c113_63 = arith.constant 113 : index
    %105 = vector.load %arg3[%c0_62, %c113_63] : memref<1x512xf32, #tpu.memory_space<vmem>>, vector<1x64xf32>
    %106 = arith.addf %104, %105 : vector<1x64xf32>
    %107 = tpu.iota {dimensions = array<i32: 0>} : vector<8x8xi32>
    %108 = tpu.iota {dimensions = array<i32: 1>} : vector<8x8xi32>
    %109 = arith.cmpi eq, %107, %108 : vector<8x8xi32>
    %110 = arith.extui %109 : vector<8x8xi1> to vector<8x8xi32>
    %111 = arith.sitofp %110 : vector<8x8xi32> to vector<8x8xf32>
    %112 = vector.extract_strided_slice %106 {offsets = [0, 0], sizes = [1, 8], strides = [1, 1]} : vector<1x64xf32> to vector<1x8xf32>
    %113 = vector.shape_cast %112 : vector<1x8xf32> to vector<1x8xf32>
    %114 = vector.broadcast %113 : vector<1x8xf32> to vector<8x8xf32>
    %c0_i32_64 = arith.constant 0 : i32
    %115 = vector.broadcast %c0_i32_64 : i32 to vector<8x8xi32>
    %116 = arith.cmpi eq, %107, %115 : vector<8x8xi32>
    %cst_65 = arith.constant 0.000000e+00 : f32
    %117 = vector.broadcast %cst_65 : f32 to vector<8x8xf32>
    %118 = arith.select %116, %114, %117 : vector<8x8xi1>, vector<8x8xf32>
    %119 = arith.addf %111, %118 : vector<8x8xf32>
    %120 = vector.extract_strided_slice %106 {offsets = [0, 8], sizes = [1, 8], strides = [1, 1]} : vector<1x64xf32> to vector<1x8xf32>
    %121 = vector.shape_cast %120 : vector<1x8xf32> to vector<1x8xf32>
    %122 = vector.broadcast %121 : vector<1x8xf32> to vector<8x8xf32>
    %c1_i32_66 = arith.constant 1 : i32
    %123 = vector.broadcast %c1_i32_66 : i32 to vector<8x8xi32>
    %124 = arith.cmpi eq, %107, %123 : vector<8x8xi32>
    %cst_67 = arith.constant 0.000000e+00 : f32
    %125 = vector.broadcast %cst_67 : f32 to vector<8x8xf32>
    %126 = arith.select %124, %122, %125 : vector<8x8xi1>, vector<8x8xf32>
    %127 = arith.addf %119, %126 : vector<8x8xf32>
    %128 = vector.extract_strided_slice %106 {offsets = [0, 16], sizes = [1, 8], strides = [1, 1]} : vector<1x64xf32> to vector<1x8xf32>
    %129 = vector.shape_cast %128 : vector<1x8xf32> to vector<1x8xf32>
    %130 = vector.broadcast %129 : vector<1x8xf32> to vector<8x8xf32>
    %c2_i32_68 = arith.constant 2 : i32
    %131 = vector.broadcast %c2_i32_68 : i32 to vector<8x8xi32>
    %132 = arith.cmpi eq, %107, %131 : vector<8x8xi32>
    %cst_69 = arith.constant 0.000000e+00 : f32
    %133 = vector.broadcast %cst_69 : f32 to vector<8x8xf32>
    %134 = arith.select %132, %130, %133 : vector<8x8xi1>, vector<8x8xf32>
    %135 = arith.addf %127, %134 : vector<8x8xf32>
    %136 = vector.extract_strided_slice %106 {offsets = [0, 24], sizes = [1, 8], strides = [1, 1]} : vector<1x64xf32> to vector<1x8xf32>
    %137 = vector.shape_cast %136 : vector<1x8xf32> to vector<1x8xf32>
    %138 = vector.broadcast %137 : vector<1x8xf32> to vector<8x8xf32>
    %c3_i32 = arith.constant 3 : i32
    %139 = vector.broadcast %c3_i32 : i32 to vector<8x8xi32>
    %140 = arith.cmpi eq, %107, %139 : vector<8x8xi32>
    %cst_70 = arith.constant 0.000000e+00 : f32
    %141 = vector.broadcast %cst_70 : f32 to vector<8x8xf32>
    %142 = arith.select %140, %138, %141 : vector<8x8xi1>, vector<8x8xf32>
    %143 = arith.addf %135, %142 : vector<8x8xf32>
    %144 = vector.extract_strided_slice %106 {offsets = [0, 32], sizes = [1, 8], strides = [1, 1]} : vector<1x64xf32> to vector<1x8xf32>
    %145 = vector.shape_cast %144 : vector<1x8xf32> to vector<1x8xf32>
    %146 = vector.broadcast %145 : vector<1x8xf32> to vector<8x8xf32>
    %c4_i32 = arith.constant 4 : i32
    %147 = vector.broadcast %c4_i32 : i32 to vector<8x8xi32>
    %148 = arith.cmpi eq, %107, %147 : vector<8x8xi32>
    %cst_71 = arith.constant 0.000000e+00 : f32
    %149 = vector.broadcast %cst_71 : f32 to vector<8x8xf32>
    %150 = arith.select %148, %146, %149 : vector<8x8xi1>, vector<8x8xf32>
    %151 = arith.addf %143, %150 : vector<8x8xf32>
    %152 = vector.extract_strided_slice %106 {offsets = [0, 40], sizes = [1, 8], strides = [1, 1]} : vector<1x64xf32> to vector<1x8xf32>
    %153 = vector.shape_cast %152 : vector<1x8xf32> to vector<1x8xf32>
    %154 = vector.broadcast %153 : vector<1x8xf32> to vector<8x8xf32>
    %c5_i32 = arith.constant 5 : i32
    %155 = vector.broadcast %c5_i32 : i32 to vector<8x8xi32>
    %156 = arith.cmpi eq, %107, %155 : vector<8x8xi32>
    %cst_72 = arith.constant 0.000000e+00 : f32
    %157 = vector.broadcast %cst_72 : f32 to vector<8x8xf32>
    %158 = arith.select %156, %154, %157 : vector<8x8xi1>, vector<8x8xf32>
    %159 = arith.addf %151, %158 : vector<8x8xf32>
    %160 = vector.extract_strided_slice %106 {offsets = [0, 48], sizes = [1, 8], strides = [1, 1]} : vector<1x64xf32> to vector<1x8xf32>
    %161 = vector.shape_cast %160 : vector<1x8xf32> to vector<1x8xf32>
    %162 = vector.broadcast %161 : vector<1x8xf32> to vector<8x8xf32>
    %c6_i32 = arith.constant 6 : i32
    %163 = vector.broadcast %c6_i32 : i32 to vector<8x8xi32>
    %164 = arith.cmpi eq, %107, %163 : vector<8x8xi32>
    %cst_73 = arith.constant 0.000000e+00 : f32
    %165 = vector.broadcast %cst_73 : f32 to vector<8x8xf32>
    %166 = arith.select %164, %162, %165 : vector<8x8xi1>, vector<8x8xf32>
    %167 = arith.addf %159, %166 : vector<8x8xf32>
    %168 = vector.extract_strided_slice %106 {offsets = [0, 56], sizes = [1, 8], strides = [1, 1]} : vector<1x64xf32> to vector<1x8xf32>
    %169 = vector.shape_cast %168 : vector<1x8xf32> to vector<1x8xf32>
    %170 = vector.broadcast %169 : vector<1x8xf32> to vector<8x8xf32>
    %c7_i32 = arith.constant 7 : i32
    %171 = vector.broadcast %c7_i32 : i32 to vector<8x8xi32>
    %172 = arith.cmpi eq, %107, %171 : vector<8x8xi32>
    %cst_74 = arith.constant 0.000000e+00 : f32
    %173 = vector.broadcast %cst_74 : f32 to vector<8x8xf32>
    %174 = arith.select %172, %170, %173 : vector<8x8xi1>, vector<8x8xf32>
    %175 = arith.addf %167, %174 : vector<8x8xf32>
    %c0_75 = arith.constant 0 : index
    %c0_76 = arith.constant 0 : index
    %c0_77 = arith.constant 0 : index
    %176 = vector.load %arg6[%c0_75, %c0_76, %c0_77] : memref<1x8x8xf32, #tpu.memory_space<vmem>>, vector<1x8x8xf32>
    %177 = vector.shape_cast %176 : vector<1x8x8xf32> to vector<8x8xf32>
    %178 = vector.shape_cast %175 : vector<8x8xf32> to vector<1x8x8xf32>
    tpu.vector_store %arg6[%c0_75, %c0_76, %c0_77], %178 {strides = array<i32>} : memref<1x8x8xf32, #tpu.memory_space<vmem>>, vector<1x8x8xf32>,
    %cst_78 = arith.constant dense<0.000000e+00> : vector<64x8xf32>
    %179 = tpu.matmul %74, %175, %cst_78 {dimension_numbers = #tpu.dot_dimension_numbers<[1], [0], [0], [1], [0, 0, 1, 1], [], []>} : vector<64x8xf32>, vector<8x8xf32>, vector<64x8xf32> -> vector<64x8xf32>
    %c0_79 = arith.constant 0 : index
    %c177 = arith.constant 177 : index
    %180 = vector.load %arg2[%c0_79, %c177] : memref<128x640xf32, #tpu.memory_space<vmem>>, vector<8x16xf32>
    %cst_80 = arith.constant dense<0.000000e+00> : vector<64x16xf32>
    %181 = tpu.matmul %179, %180, %cst_80 {dimension_numbers = #tpu.dot_dimension_numbers<[1], [0], [0], [1], [0, 0, 1, 1], [], []>} : vector<64x8xf32>, vector<8x16xf32>, vector<64x16xf32> -> vector<64x16xf32>
    %c0_81 = arith.constant 0 : index
    %c177_82 = arith.constant 177 : index
    %182 = vector.load %arg3[%c0_81, %c177_82] : memref<1x512xf32, #tpu.memory_space<vmem>>, vector<1x16xf32>
    %183 = vector.broadcast %182 : vector<1x16xf32> to vector<64x16xf32>
    %184 = arith.addf %181, %183 : vector<64x16xf32>
    %cst_83 = arith.constant 0.000000e+00 : f32
    %185 = vector.broadcast %cst_83 : f32 to vector<64x16xf32>
    %186 = arith.maximumf %184, %185 : vector<64x16xf32>
    %c0_84 = arith.constant 0 : index
    %c193 = arith.constant 193 : index
    %187 = vector.load %arg2[%c0_84, %c193] : memref<128x640xf32, #tpu.memory_space<vmem>>, vector<16x32xf32>
    %cst_85 = arith.constant dense<0.000000e+00> : vector<64x32xf32>
    %188 = tpu.matmul %186, %187, %cst_85 {dimension_numbers = #tpu.dot_dimension_numbers<[1], [0], [0], [1], [0, 0, 1, 1], [], []>} : vector<64x16xf32>, vector<16x32xf32>, vector<64x32xf32> -> vector<64x32xf32>
    %c0_86 = arith.constant 0 : index
    %c193_87 = arith.constant 193 : index
    %189 = vector.load %arg3[%c0_86, %c193_87] : memref<1x512xf32, #tpu.memory_space<vmem>>, vector<1x32xf32>
    %190 = vector.broadcast %189 : vector<1x32xf32> to vector<64x32xf32>
    %191 = arith.addf %188, %190 : vector<64x32xf32>
    %cst_88 = arith.constant dense<0xFF800000> : vector<32xf32>
    %192 = vector.multi_reduction <maximumf>, %191, %cst_88 [0] : vector<64x32xf32> to vector<32xf32>
    %193 = vector.shape_cast %192 : vector<32xf32> to vector<1x32xf32>
    %c0_89 = arith.constant 0 : index
    %c353 = arith.constant 353 : index
    %194 = vector.load %arg2[%c0_89, %c353] : memref<128x640xf32, #tpu.memory_space<vmem>>, vector<32x128xf32>
    %cst_90 = arith.constant dense<0.000000e+00> : vector<1x128xf32>
    %195 = tpu.matmul %193, %194, %cst_90 {dimension_numbers = #tpu.dot_dimension_numbers<[1], [0], [0], [1], [0, 0, 1, 1], [], []>} : vector<1x32xf32>, vector<32x128xf32>, vector<1x128xf32> -> vector<1x128xf32>
    %c0_91 = arith.constant 0 : index
    %c225 = arith.constant 225 : index
    %196 = vector.load %arg2[%c0_91, %c225] : memref<128x640xf32, #tpu.memory_space<vmem>>, vector<8x128xf32>
    %cst_92 = arith.constant dense<0.000000e+00> : vector<64x128xf32>
    %197 = tpu.matmul %179, %196, %cst_92 {dimension_numbers = #tpu.dot_dimension_numbers<[1], [0], [0], [1], [0, 0, 1, 1], [], []>} : vector<64x8xf32>, vector<8x128xf32>, vector<64x128xf32> -> vector<64x128xf32>
    %198 = vector.broadcast %195 : vector<1x128xf32> to vector<64x128xf32>
    %199 = arith.addf %197, %198 : vector<64x128xf32>
    %c0_93 = arith.constant 0 : index
    %c225_94 = arith.constant 225 : index
    %200 = vector.load %arg3[%c0_93, %c225_94] : memref<1x512xf32, #tpu.memory_space<vmem>>, vector<1x128xf32>
    %201 = vector.broadcast %200 : vector<1x128xf32> to vector<64x128xf32>
    %202 = arith.addf %199, %201 : vector<64x128xf32>
    %cst_95 = arith.constant 0.000000e+00 : f32
    %203 = vector.broadcast %cst_95 : f32 to vector<64x128xf32>
    %204 = arith.maximumf %202, %203 : vector<64x128xf32>
    %c0_96 = arith.constant 0 : index
    %c481 = arith.constant 481 : index
    %205 = vector.load %arg2[%c0_96, %c481] : memref<128x640xf32, #tpu.memory_space<vmem>>, vector<128x64xf32>
    %cst_97 = arith.constant dense<0.000000e+00> : vector<64x64xf32>
    %206 = tpu.matmul %204, %205, %cst_97 {dimension_numbers = #tpu.dot_dimension_numbers<[1], [0], [0], [1], [0, 0, 1, 1], [], []>} : vector<64x128xf32>, vector<128x64xf32>, vector<64x64xf32> -> vector<64x64xf32>
    %c0_98 = arith.constant 0 : index
    %c353_99 = arith.constant 353 : index
    %207 = vector.load %arg3[%c0_98, %c353_99] : memref<1x512xf32, #tpu.memory_space<vmem>>, vector<1x64xf32>
    %208 = vector.broadcast %207 : vector<1x64xf32> to vector<64x64xf32>
    %209 = arith.addf %206, %208 : vector<64x64xf32>
    %cst_100 = arith.constant 0.000000e+00 : f32
    %210 = vector.broadcast %cst_100 : f32 to vector<64x64xf32>
    %211 = arith.maximumf %209, %210 : vector<64x64xf32>
    %c0_101 = arith.constant 0 : index
    %c545 = arith.constant 545 : index
    %212 = vector.load %arg2[%c0_101, %c545] : memref<128x640xf32, #tpu.memory_space<vmem>>, vector<1x64xf32>
    "tpu.trace_start"() <{level = 10 : i32, message = "ic,nc->in"}> : () -> ()
    %cst_102 = arith.constant dense<0.000000e+00> : vector<1x64xf32>
    %213 = tpu.matmul %212, %211, %cst_102 {dimension_numbers = #tpu.dot_dimension_numbers<[1], [1], [0], [0], [0, 0, 1, 0], [], []>} : vector<1x64xf32>, vector<64x64xf32>, vector<1x64xf32> -> vector<1x64xf32>
    "tpu.trace_stop"() : () -> ()
    %c0_103 = arith.constant 0 : index
    %c417 = arith.constant 417 : index
    %214 = vector.load %arg3[%c0_103, %c417] : memref<1x512xf32, #tpu.memory_space<vmem>>, vector<1x1xf32>
    %215 = vector.broadcast %214 : vector<1x1xf32> to vector<1x64xf32>
    %216 = arith.addf %213, %215 : vector<1x64xf32>
    %c0_104 = arith.constant 0 : index
    %c0_105 = arith.constant 0 : index
    %c0_106 = arith.constant 0 : index
    %217 = vector.load %arg4[%c0_104, %c0_105, %c0_106] : memref<1x1x64xf32, #tpu.memory_space<vmem>>, vector<1x1x64xf32>
    %218 = vector.shape_cast %217 : vector<1x1x64xf32> to vector<1x64xf32>
    %219 = vector.shape_cast %216 : vector<1x64xf32> to vector<1x1x64xf32>
    tpu.vector_store %arg4[%c0_104, %c0_105, %c0_106], %219 {strides = array<i32>} : memref<1x1x64xf32, #tpu.memory_space<vmem>>, vector<1x1x64xf32>,
    return
  }
  func.func @transform_0(%arg0: i32) -> (i32, i32, i32) {
    %c0_i32 = arith.constant 0 : i32
    %c0_i32_0 = arith.constant 0 : i32
    %c0_i32_1 = arith.constant 0 : i32
    return %arg0, %c0_i32, %c0_i32_0 : i32, i32, i32
  }
  func.func @transform_1(%arg0: i32) -> (i32, i32) {
    %c0_i32 = arith.constant 0 : i32
    %c0_i32_0 = arith.constant 0 : i32
    %c0_i32_1 = arith.constant 0 : i32
    return %c0_i32, %c0_i32_0 : i32, i32
  }
  func.func @transform_2(%arg0: i32) -> (i32, i32) {
    %c0_i32 = arith.constant 0 : i32
    %c0_i32_0 = arith.constant 0 : i32
    %c0_i32_1 = arith.constant 0 : i32
    return %c0_i32, %c0_i32_0 : i32, i32
  }
  func.func @transform_3(%arg0: i32) -> (i32, i32, i32) {
    %c0_i32 = arith.constant 0 : i32
    %c0_i32_0 = arith.constant 0 : i32
    %c0_i32_1 = arith.constant 0 : i32
    return %arg0, %c0_i32, %c0_i32_0 : i32, i32, i32
  }
  func.func @transform_4(%arg0: i32) -> (i32, i32, i32) {
    %c0_i32 = arith.constant 0 : i32
    %c0_i32_0 = arith.constant 0 : i32
    %c0_i32_1 = arith.constant 0 : i32
    return %arg0, %c0_i32, %c0_i32_0 : i32, i32, i32
  }
  func.func @transform_5(%arg0: i32) -> (i32, i32, i32) {
    %c0_i32 = arith.constant 0 : i32
    %c0_i32_0 = arith.constant 0 : i32
    %c0_i32_1 = arith.constant 0 : i32
    return %arg0, %c0_i32, %c0_i32_0 : i32, i32, i32
  }
}

</mosaic_0001>

<bundles_post_ra>
// kernel: pointnet_forward.1
= control target key start
LH: loop header
LB: loop body
LE: loop exit
PB: predicated region body
PF: predicated region fallthrough
CT: control target
= control target key end

     0   :  { %11 = vsyncpa [#allocation3], 0  ;;  %s4555_s0 = inlined_call_operand.vmem [shape: f32[2,64,8], index: 0, kind: input, shape index: {}]   ;;  %s4556_s1 = inlined_call_operand.vmem [shape: f32[128,640], index: 1, kind: input, shape index: {}]   ;;  %s4557_s2 = inlined_call_operand.vmem [shape: f32[1,512], index: 2, kind: input, shape index: {}]   ;;  %s4558_s3 = inlined_call_operand.hbm [shape: f32[2,1,64], index: 3, kind: output, shape index: {0}]   ;;  %s4559_s4 = inlined_call_operand.vmem [shape: f32[2,3,3], index: 4, kind: output, shape index: {1}]   ;;  %s4560_s5 = inlined_call_operand.hbm [shape: f32[2,8,8], index: 5, kind: output, shape index: {2}]  }
   0x1   :  { %13 = vsyncpa [#allocation3 + $0x1], 0 }
   0x2   :  { %14 = vsyncpa [#allocation5], 0 }
   0x3   :  { %16 = vsyncpa [#allocation5 + $0x1], 0  ;;  %s3817_s18 = smov 0   ;;  %s3819_s19 = smov 0  }
   0x4   :  { %s3821_s20 = smov 0   ;;  %s3823_s21 = smov 0  }
   0x5 LB: > { %s3838_s22 = sadd.s32 4294967295, %s3761_s21   ;;  %s2914_s23 = sadd.s32 4294967294, %s3761_s21   ;;  %s3761_s21 = sphi %s3823_s21, %s4568_s21   ;;  %s3757_s20 = sphi %s3821_s20, %s4567_s20   ;;  %s3753_s19 = sphi %s3819_s19, %s4566_s19   ;;  %s3749_s18 = sphi %s3817_s18, %s4565_s18  }
   0x6   : > { %s3842_s24 = sadd.s32 1, %s3761_s21   ;;  %s97_s25 = sadd.s32 1, %s3757_s20 }
   0x7   : > { %s94_s26 = ssub.s32 %s3761_s21, %s3842_s24  ;;  %p107_p0 = scmp.ne.s32.totalorder %s3757_s20, %s3753_s19 }
   0x8   : > { %p95_p1 = scmp.eq.s32.totalorder %s94_s26, 0  ;;  %p108_p2 = scmp.eq.s32.totalorder %s3838_s22, 1 }
   0x9   : > { %p113_p3 = scmp.ne.s32.totalorder %s3753_s19, %s3749_s18  ;;  %p114_p4 = scmp.eq.s32.totalorder %s2914_s23, 1 }
   0xa   : > { %s3853_s27 = scalar_select %p95_p1, %s3757_s20, %s97_s25  }
   0xb   : > { %p3855_p5 = por %p108_p2, %p107_p0  ;;  %p3859_p6 = por %p114_p4, %p113_p3 }
   0xc   : > { %p2917_p7 = scmp.ge.s32.totalorder %s3761_s21, 1  ;;  %p198_p8 = scmp.lt.s32.totalorder %s3761_s21, 3 }
   0xe   : > { %p199_p9 = pnand %p2917_p7, %p198_p8 }
   0xf   : > { %v3868_v0 = vld [vmem:[%s4556_s1] sm:$0xff] (!%p199_p9)  ;;  %p234_p10 = scmp.lt.s32.totalorder (!%p199_p9), %s3838_s22, 1  ;;  %s3763_s7 = smov (!%p199_p9), 120   ;;  %vm259_vm0 = vcmask (!%p199_p9), 64512   ;;  %v564_v10 = vld [vmem:[%s4556_s1 + $0x28] sm:$0xff] (!%p199_p9)  ;;  %v3765_v41 = vmov (!%p199_p9), 0.0|0.0  }
  0x10   : > { %202 = sbr.rel (%p199_p9) target bundleno = 4322 (0x10e2), region = 32  ;;  %3160 = vmatprep.subr.mxu0 (!%p199_p9), %v3868_v0  ;;  %398 = vrot.lane.b32.xlu0 (!%p199_p9), %v3868_v0, %s3763_s7  ;;  %v3917_v9 = vld [vmem:[%s4557_s2] ss:$0 sm:$0xff] (!%p199_p9)  ;;  %v3925_v11 = vpack.i.bf16 (!%p199_p9), %v564_v10, %v3868_v0  ;;  %s3764_s17 = smov (!%p199_p9), 104   ;;  %vm3766_vm1 = vmmov (!%p199_p9), 0   ;;  %v3767_v42 = vmov (!%p199_p9), 0.0  }
  0x11   : > { %3161 = vmatpush3.msra.mxu0 (!%p199_p9), %v3868_v0  ;;  %s3768_s23 = smov (!%p199_p9), 88   ;;  %vm541_vm2 = vcmask (!%p199_p9), 130048   ;;  %s3769_s25 = smov (!%p199_p9), 80   ;;  %vm840_vm7 = vcmask (!%p199_p9), 18432   ;;  %vm850_vm8 = vcmask (!%p199_p9), 1042432   ;;  %vm846_vm9 = vcmask (!%p199_p9), 23552  }
  0x12   : > { %3542 = vrot.lane.b32.xlu1 (!%p199_p9), %v3925_v11, %s3764_s17  ;;  %3405 = vmatprep.subr.bf16.mxu0 (!%p199_p9), %v3765_v41  ;;  %s3770_s26 = smov (!%p199_p9), 122   ;;  %s3771_s30 = smov (!%p199_p9), 125   ;;  %vm1533_vm10 = vcmask (!%p199_p9), 121856  }
  0x13   : > { %s3772_s10 = smov (!%p199_p9), 71   ;;  %s3773_s15 = smov (!%p199_p9), 63  }
  0x14   : > { %401 = vrot.lane.b32.xlu0 (!%p199_p9), %v3917_v9, %s3763_s7  ;;  %s3775_s16 = smov (!%p199_p9), 39   ;;  %s3779_s13 = smov (!%p199_p9), 96  }
  0x15   : > { %s3018_s6 = sshll.u32 (!%p199_p9), %s3838_s22, 7 }
  0x16   : > { %3547 = vrot.lane.b32.xlu1 (!%p199_p9), %v3925_v11, %s3768_s23 }
  0x17   : > { %s3876_s8 = scalar_select %p234_p10, %s3838_s22, 1 }
  0x18   : > { %573 = vrot.lane.b32.xlu0 %v3917_v9, %s3764_s17 }
  0x19   : > { %s3021_s9 = sshll.u32 %s3876_s8, 6  ;;  %s2921_s11 = sshll.u32 %s3876_s8, 2 }
  0x1a   : > { %s238_s12 = scalar_lea.vmem %s4555_s0, %s3021_s9  ;;  %656 = vrot.lane.b32.xlu1 %v3917_v9, %s3768_s23  ;;  %s242_s14 = scalar_lea.vmem %s4559_s4, %s2921_s11 }
  0x1b   : > { %v3882_v1 = vld [vmem:[%s238_s12] sm:$0xff]  ;;  %v3884_v2 = vld [vmem:[%s238_s12 + $0x8] sm:$0xff]  ;;  %v3886_v3 = vld [vmem:[%s238_s12 + $0x10] sm:$0xff]  ;;  %s3774_s8 = smov 55   ;;  %s3777_s9 = smov 15  }
  0x1c   : > { %3162 = vmatprep.mubr.msk.f32.mxu0 %vm259_vm0, %v3882_v1  ;;  %v3894_v4 = vld [vmem:[%s238_s12 + $0x18] sm:$0xff]  ;;  %v3896_v5 = vld [vmem:[%s238_s12 + $0x20] sm:$0xff]  ;;  %v3902_v6 = vld [vmem:[%s238_s12 + $0x28] sm:$0xff]  ;;  %733 = vrot.lane.b32.xlu0 %v3868_v0, %s3769_s25 }
  0x1d   : > { %3163 = vmatmul.mubr.msk.f32.vlgmr.msra.gmra.mrb[0].mxu0 %vm259_vm0, %v3884_v2  ;;  %v3904_v7 = vld [vmem:[%s238_s12 + $0x30] sm:$0xff]  ;;  %v3910_v8 = vld [vmem:[%s238_s12 + $0x38] sm:$0xff]  ;;  %s3778_s12 = smov 112  }
  0x1e   : > { %3165 = vmatprep.mubr.msk.f32.mxu0 %vm259_vm0, %v3886_v3  ;;  %736 = vrot.lane.b32.xlu1 %v3917_v9, %s3769_s25 }
  0x21   : > { %3166 = vmatmul.mubr.msk.f32.gmra.mrb[2].mxu0 %vm259_vm0, %v3894_v4 }
  0x22   : > { %3168 = vmatprep.mubr.msk.f32.mxu0 %vm259_vm0, %v3896_v5 }
  0x25   : > { %3169 = vmatmul.mubr.msk.f32.gmra.mrb[4].mxu0 %vm259_vm0, %v3902_v6 }
  0x26   : > { %3171 = vmatprep.mubr.msk.f32.mxu0 %vm259_vm0, %v3904_v7 }
  0x29   : > { %3172 = vmatmul.mubr.msk.f32.gmra.mrb[6].mxu0 %vm259_vm0, %v3910_v8 }
  0x2a   : > { %3192 = vmatprep.mubr.msk.f32.mxu0 %vm3766_vm1, %v3767_v42 }
  0x82   : > { %v399_v12 = vpop.permute.xlu0 %398 }
  0x83   : > { %3174 = vmatprep.subr.mxu1 %v399_v12 }
  0x84   : > { %3175 = vmatpush3.msra.mxu1 %v399_v12  ;;  %v3543_v37 = vpop.permute.xlu1 %3542 }
  0x85   : > { %v3545_v38 = vunpack.i.h.bf16 %v3543_v37  ;;  %v3544_v39 = vunpack.i.l.bf16 %v3543_v37  ;;  %3408 = vmatprep.subr.bf16.mxu1 %v3765_v41 }
  0x86   : > { %v402_v44 = vpop.permute.xlu0 %401 }
  0x87   : > { %v3406_v40 = vpack.c.bf16 %v3545_v38, %v3544_v39 }
  0x89   : > { %3407 = vmatpush3.bf16.msra.mxu0 %v3406_v40 }
  0x8a   : > { %3202 = vmatprep.subr.mxu0 %v3767_v42  ;;  %v574_v40 = vpop.permute.xlu0 %573 }
  0xf0   : > { %v3164_v13 = vpop.f32.mrb[0].mxu0 }
  0xf1   : > { %v356_v14 = vadd.f32 %v3164_v13, %v3917_v9  ;;  %v350_v15 = vpop.f32.mrb[1].mxu0 }
  0xf2   : > { %v351_v16 = vadd.f32 %v3917_v9, %v350_v15 }
  0xf3   : > { %v390_v19 = vmax.f32 %v356_v14, 0.0 }
  0xf4   : > { %v389_v17 = vmax.f32 %v351_v16, 0.0  ;;  %v3167_v18 = vpop.f32.mrb[2].mxu0 }
  0xf5   : > { %v366_v20 = vadd.f32 %v3167_v18, %v3917_v9  ;;  %v360_v21 = vpop.f32.mrb[3].mxu0 }
  0xf6   : > { %v361_v22 = vadd.f32 %v3917_v9, %v360_v21  ;;  %3176 = vmatprep.mubr.msk.f32.mxu1 %vm259_vm0, %v389_v17 }
  0xf7   : > { %3177 = vmatmul.mubr.msk.f32.vlgmr.msra.gmra.mrb[0].mxu1 %vm259_vm0, %v390_v19  ;;  %v392_v25 = vmax.f32 %v366_v20, 0.0 }
  0xf8   : > { %v391_v23 = vmax.f32 %v361_v22, 0.0  ;;  %v3170_v24 = vpop.f32.mrb[4].mxu0 }
  0xf9   : > { %v376_v26 = vadd.f32 %v3170_v24, %v3917_v9  ;;  %v370_v27 = vpop.f32.mrb[5].mxu0 }
  0xfa   : > { %v371_v28 = vadd.f32 %v3917_v9, %v370_v27  ;;  %3179 = vmatprep.mubr.msk.f32.mxu1 %vm259_vm0, %v391_v23 }
  0xfb   : > { %3180 = vmatmul.mubr.msk.f32.gmra.mrb[2].mxu1 %vm259_vm0, %v392_v25  ;;  %v394_v31 = vmax.f32 %v376_v26, 0.0 }
  0xfc   : > { %v393_v29 = vmax.f32 %v371_v28, 0.0  ;;  %v3173_v30 = vpop.f32.mrb[6].mxu0 }
  0xfd   : > { %v386_v32 = vadd.f32 %v3173_v30, %v3917_v9  ;;  %v380_v33 = vpop.f32.mrb[7].mxu0  ;;  %v3548_v30 = vpop.permute.xlu1 %3547 }
  0xfe   : > { %v381_v34 = vadd.f32 %v3917_v9, %v380_v33  ;;  %3182 = vmatprep.mubr.msk.f32.mxu1 %vm259_vm0, %v393_v29  ;;  %v3549_v33 = vunpack.i.l.bf16 %v3548_v30 }
  0xff   : > { %3183 = vmatmul.mubr.msk.f32.gmra.mrb[4].mxu1 %vm259_vm0, %v394_v31  ;;  %v396_v36 = vmax.f32 %v386_v32, 0.0  ;;  %v3550_v32 = vunpack.i.h.bf16 %v3548_v30 }
 0x100   : > { %v395_v35 = vmax.f32 %v381_v34, 0.0 }
 0x102   : > { %3185 = vmatprep.mubr.msk.f32.mxu1 %vm259_vm0, %v395_v35  ;;  %v3409_v35 = vpack.c.bf16 %v3550_v32, %v3549_v33 }
 0x103   : > { %3186 = vmatmul.mubr.msk.f32.gmra.mrb[6].mxu1 %vm259_vm0, %v396_v36 }
 0x104   : > { %3199 = vmatprep.mubr.msk.f32.mxu1 %vm3766_vm1, %v3767_v42  ;;  %3410 = vmatpush3.bf16.msra.mxu1 %v3409_v35 }
 0x105   : > { %3207 = vmatprep.subr.mxu1 %v3767_v42 }
 0x1ca   : > { %v3178_v43 = vpop.f32.mrb[0].mxu1 }
 0x1cb   : > { %v494_v45 = vpop.f32.mrb[1].mxu1  ;;  %v500_v46 = vadd.f32 %v3178_v43, %v402_v44 }
 0x1cc   : > { %v495_v48 = vadd.f32 %v494_v45, %v402_v44 }
 0x1cd   : > { %v534_v50 = vmax.f32 %v500_v46, 0.0 }
 0x1ce   : > { %v3181_v47 = vpop.f32.mrb[2].mxu1  ;;  %v533_v52 = vmax.f32 %v495_v48, 0.0  ;;  %v657_v48 = vpop.permute.xlu1 %656 }
 0x1cf   : > { %v504_v49 = vpop.f32.mrb[3].mxu1  ;;  %v510_v53 = vadd.f32 %v3181_v47, %v402_v44  ;;  %v543_v59 = vsel %vm541_vm2, %v534_v50, -inf  ;;  %v734_v47 = vpop.permute.xlu0 %733 }
 0x1d0   : > { %v505_v56 = vadd.f32 %v504_v49, %v402_v44  ;;  %v542_v62 = vsel %vm541_vm2, %v533_v52, -inf }
 0x1d1   : > { %v536_v63 = vmax.f32 %v510_v53, 0.0  ;;  %v812_v53 = vlaneseq }
 0x1d2   : > { %v3184_v51 = vpop.f32.mrb[4].mxu1  ;;  %v535_v14 = vmax.f32 %v505_v56, 0.0 }
 0x1d3   : > { %v520_v54 = vadd.f32 %v3184_v51, %v402_v44  ;;  %v514_v55 = vpop.f32.mrb[5].mxu1  ;;  %v545_v21 = vsel %vm541_vm2, %v536_v63, -inf  ;;  %v815_v63 = vand.u32 127, %v812_v53 }
 0x1d4   : > { %v515_v57 = vadd.f32 %v514_v55, %v402_v44  ;;  %v544_v24 = vsel %vm541_vm2, %v535_v14, -inf  ;;  %v737_v55 = vpop.permute.xlu1 %736 }
 0x1d5   : > { %v538_v58 = vmax.f32 %v520_v54, 0.0  ;;  %v3980_v54 = vshrl.u32 %v812_v53, 7 }
 0x1d6   : > { %v537_v60 = vmax.f32 %v515_v57, 0.0  ;;  %v3187_v61 = vpop.f32.mrb[6].mxu1 }
 0x1d7   : > { %v548_v10 = vsel %vm541_vm2, %v538_v58, -inf  ;;  %v530_v12 = vadd.f32 %v3187_v61, %v402_v44  ;;  %v524_v13 = vpop.f32.mrb[7].mxu1  ;;  %v3983_v56 = vsub.s32 0, %v3980_v54  ;;  %vm833_vm3 = vcmp.eq.s32.totalorder %v3980_v54, 2 }
 0x1d8   : > { %v549_v15 = vmax.f32 %v543_v59, %v548_v10  ;;  %v546_v16 = vsel %vm541_vm2, %v537_v60, -inf  ;;  %v525_v17 = vadd.f32 %v524_v13, %v402_v44  ;;  %vm826_vm4 = vcmp.eq.s32.totalorder %v3980_v54, 1 }
 0x1d9   : > { %v547_v18 = vmax.f32 %v542_v62, %v546_v16  ;;  %v540_v19 = vmax.f32 %v530_v12, 0.0  ;;  %v842_v62 = vld [vmem:[%s4556_s1] sm:$0x7]  ;;  %vm816_vm5 = vcmp.eq.s32.totalorder %v3980_v54, %v815_v63  ;;  %vm823_vm6 = vcmp.eq.s32.totalorder %v3980_v54, 0 }
 0x1da   : > { %v539_v20 = vmax.f32 %v525_v17, 0.0  ;;  %v3999_v10 = vsel %vm816_vm5, 1.0, %v3767_v42  ;;  %vm1649_vm11 = vcmp.eq.s32.totalorder %v3980_v54, 4  ;;  %vm1642_vm12 = vcmp.eq.s32.totalorder %v3980_v54, 3 }
 0x1db   : > { %v554_v22 = vmax.f32 %v547_v18, %v549_v15  ;;  %v552_v23 = vsel %vm541_vm2, %v540_v19, -inf  ;;  %vm1663_vm13 = vcmp.eq.s32.totalorder %v3980_v54, 6  ;;  %vm1656_vm14 = vcmp.eq.s32.totalorder %v3980_v54, 5 }
 0x1dc   : > { %v553_v25 = vmax.f32 %v545_v21, %v552_v23  ;;  %v550_v26 = vsel %vm541_vm2, %v539_v20, -inf  ;;  %vm1670_vm15 = vcmp.eq.s32.totalorder %v3980_v54, 7 }
 0x1dd   : > { %v551_v27 = vmax.f32 %v544_v24, %v550_v26 }
 0x1df   : > { %v555_v28 = vmax.f32 %v551_v27, %v553_v25 }
 0x1e1   : > { %v556_v29 = vmax.f32 %v554_v22, %v555_v28 }
 0x1e3   : > { %v557_v31 = vrot.slane %v556_v29, 4 }
 0x1e5   : > { %v558_v34 = vmax.f32 %v556_v29, %v557_v31 }
 0x1e7   : > { %v559_v36 = vrot.slane %v558_v34, 2 }
 0x1e9   : > { %v560_v37 = vmax.f32 %v558_v34, %v559_v36 }
 0x1eb   : > { %v561_v38 = vrot.slane %v560_v37, 1 }
 0x1ed   : > { %v562_v39 = vmax.f32 %v560_v37, %v561_v38 }
 0x1ef   : > { %3193 = vmatmul.mubr.msk.f32.vlgmr.msra.gmra.mrb[8].mxu0 %vm541_vm2, %v562_v39 }
 0x1f0   : > { %3204 = vmatprep.mubr.msk.f32.mxu0 %vm3766_vm1, %v3767_v42  ;;  %3203 = vmatpush3.msra.mxu0 %v734_v47 }
 0x2c2   : > { %v645_v43 = vpop.f32.mrb[8].mxu0 }
 0x2c3   : > { %v646_v44 = vadd.f32 %v645_v43, %v574_v40  ;;  %v3194_v45 = vpop.f32.mrb[9].mxu0 }
 0x2c5   : > { %v649_v46 = vmax.f32 %v646_v44, 0.0 }
 0x2c7   : > { %3200 = vmatmul.mubr.msk.f32.vlgmr.msra.gmra.mrb[8].mxu1 %vm541_vm2, %v649_v46 }
 0x2c8   : > { %3209 = vmatprep.mubr.msk.f32.mxu1 %vm3766_vm1, %v3767_v42 }
 0x39a   : > { %v728_v49 = vpop.f32.mrb[8].mxu1 }
 0x39b   : > { %v729_v50 = vadd.f32 %v728_v49, %v657_v48  ;;  %v3201_v51 = vpop.f32.mrb[9].mxu1 }
 0x39d   : > { %v732_v52 = vmax.f32 %v729_v50, 0.0 }
 0x39f   : > { %3205 = vmatmul.mubr.msk.f32.vlgmr.msra.gmra.mrb[10].mxu0 %vm259_vm0, %v732_v52 }
 0x3a0   : > { %3214 = vmatprep.mubr.msk.f32.mxu0 %vm259_vm0, %v3882_v1 }
 0x472   : > { %v808_v57 = vpop.f32.mrb[10].mxu0 }
 0x473   : > { %v809_v58 = vadd.f32 %v808_v57, %v737_v55  ;;  %v3206_v59 = vpop.f32.mrb[11].mxu0 }
 0x475   : > { %v822_v60 = vrot.slane %v809_v58, %v3983_v56 }
 0x477   : > { %v834_v1 = vsel %vm833_vm3, %v822_v60, 0.0  ;;  %v827_v61 = vsel %vm826_vm4, %v822_v60, 0.0  ;;  %v824_v12 = vsel %vm823_vm6, %v822_v60, 0.0 }
 0x478   : > { %836 = vrot.lane.b32.xlu1 %v834_v1, %s3770_s26  ;;  %829 = vrot.lane.b32.xlu0 %v827_v61, %s3771_s30  ;;  %v825_v13 = vadd.f32 %v3999_v10, %v824_v12  ;;  %s3776_s26 = smov 23   ;;  %s3783_s30 = smov 95  }
 0x47c   : > { %844 = vrot.lane.b32.xlu0 %v842_v62, %s3772_s10  ;;  %929 = vrot.lane.b32.xlu1 %v3917_v9, %s3772_s10 }
 0x480   : > { %1047 = vrot.lane.b32.xlu0 %v3868_v0, %s3773_s15  ;;  %1050 = vrot.lane.b32.xlu1 %v3917_v9, %s3773_s15 }
 0x484   : > { %1190 = vrot.lane.b32.xlu0 %v3868_v0, %s3774_s8  ;;  %1193 = vrot.lane.b32.xlu1 %v3917_v9, %s3774_s8 }
 0x488   : > { %3552 = vrot.lane.b32.xlu0 %v3925_v11, %s3775_s16  ;;  %3557 = vrot.lane.b32.xlu1 %v3925_v11, %s3776_s26 }
 0x48c   : > { %1364 = vrot.lane.b32.xlu0 %v3917_v9, %s3775_s16  ;;  %1447 = vrot.lane.b32.xlu1 %v3917_v9, %s3776_s26 }
 0x490   : > { %1529 = vrot.lane.b32.xlu0 %v3868_v0, %s3777_s9  ;;  %v1526_v0 = vld [vmem:[%s4557_s2] sm:$0x3] }
 0x4ea   : > { %v830_v14 = vpop.permute.xlu0 %829  ;;  %v837_v16 = vpop.permute.xlu1 %836 }
 0x4eb   : > { %v832_v15 = vadd.f32 %v830_v14, %v825_v13 }
 0x4ed   : > { %v839_v17 = vadd.f32 %v837_v16, %v832_v15 }
 0x4ee   : > { %v845_v18 = vpop.permute.xlu0 %844 }
 0x4ef   : > { %841 = vst.msk [vmem:[%s242_s14] sm:$0x7] %vm840_vm7, %v839_v17  ;;  %3208 = vmatpush3.msk.msra.mxu1 %vm850_vm8, %v845_v18  ;;  %s3781_s14 = smov 79  }
 0x4f0   : > { %3210 = vmatmul.mubr.msk.f32.vlgmr.msra.gmra.mrb[10].mxu1 %vm846_vm9, %v839_v17 }
 0x4f2   : > { %v1048_v21 = vpop.permute.xlu0 %1047 }
 0x4f3   : > { %3226 = vmatprep.subr.mxu1 %v1048_v21 }
 0x4f4   : > { %3227 = vmatpush3.msra.mxu1 %v1048_v21 }
 0x4f5   : > { %3411 = vmatprep.subr.bf16.mxu1 %v3765_v41 }
 0x4f6   : > { %v1191_v26 = vpop.permute.xlu0 %1190 }
 0x4fa   : > { %v3553_v17 = vpop.permute.xlu0 %3552 }
 0x4fb   : > { %v3555_v18 = vunpack.i.h.bf16 %v3553_v17 }
 0x5c3   : > { %v919_v19 = vpop.f32.mrb[10].mxu1 }
 0x5c4   : > { %v3211_v20 = vpop.f32.mrb[11].mxu1  ;;  %3212 = vmatprep.subr.mxu0 %v919_v19 }
 0x5c5   : > { %3213 = vmatpush3.msra.mxu0 %v919_v19  ;;  %v3554_v19 = vunpack.i.l.bf16 %v3553_v17 }
 0x5c6   : > { %3215 = vmatmul.mubr.msk.f32.vlgmr.msra.gmra.mrb[12].mxu0 %vm259_vm0, %v3884_v2  ;;  %v930_v2 = vpop.permute.xlu1 %929  ;;  %3240 = vmatprep.subr.mxu0 %v1191_v26 }
 0x5c7   : > { %3217 = vmatprep.mubr.msk.f32.mxu0 %vm259_vm0, %v3886_v3  ;;  %3241 = vmatpush3.msra.mxu0 %v1191_v26  ;;  %v3412_v20 = vpack.c.bf16 %v3555_v18, %v3554_v19 }
 0x5ca   : > { %3218 = vmatmul.mubr.msk.f32.gmra.mrb[14].mxu0 %vm259_vm0, %v3894_v4  ;;  %v1051_v43 = vpop.permute.xlu1 %1050 }
 0x5cb   : > { %3220 = vmatprep.mubr.msk.f32.mxu0 %vm259_vm0, %v3896_v5 }
 0x5ce   : > { %3221 = vmatmul.mubr.msk.f32.gmra.mrb[16].mxu0 %vm259_vm0, %v3902_v6 }
 0x5cf   : > { %3223 = vmatprep.mubr.msk.f32.mxu0 %vm259_vm0, %v3904_v7 }
 0x5d2   : > { %3224 = vmatmul.mubr.msk.f32.gmra.mrb[18].mxu0 %vm259_vm0, %v3910_v8 }
 0x699   : > { %v3216_v3 = vpop.f32.mrb[12].mxu0 }
 0x69a   : > { %v4029_v4 = vadd.f32 %v3216_v3, %v930_v2  ;;  %v998_v5 = vpop.f32.mrb[13].mxu0 }
 0x69b   : > { %v4031_v6 = vadd.f32 %v998_v5, %v930_v2 }
 0x69c   : > { %v1038_v22 = vmax.f32 %v4029_v4, 0.0  ;;  %v1935_v4 = vld [vmem:[%s4556_s1 + $0x30] sm:$0xff] }
 0x69d   : > { %v1037_v7 = vmax.f32 %v4031_v6, 0.0  ;;  %v3219_v8 = vpop.f32.mrb[14].mxu0 }
 0x69e   : > { %v4035_v23 = vadd.f32 %v3219_v8, %v930_v2  ;;  %v1008_v24 = vpop.f32.mrb[15].mxu0 }
 0x69f   : > { %v4037_v25 = vadd.f32 %v1008_v24, %v930_v2  ;;  %3228 = vmatprep.mubr.msk.f32.mxu1 %vm259_vm0, %v1037_v7 }
 0x6a0   : > { %3229 = vmatmul.mubr.msk.f32.vlgmr.msra.gmra.mrb[12].mxu1 %vm259_vm0, %v1038_v22  ;;  %v1040_v29 = vmax.f32 %v4035_v23, 0.0 }
 0x6a1   : > { %v1039_v27 = vmax.f32 %v4037_v25, 0.0  ;;  %v3222_v28 = vpop.f32.mrb[16].mxu0  ;;  %3413 = vmatpush3.bf16.msra.mxu1 %v3412_v20 }
 0x6a2   : > { %v4047_v30 = vadd.f32 %v3222_v28, %v930_v2  ;;  %v1018_v31 = vpop.f32.mrb[17].mxu0  ;;  %3414 = vmatprep.subr.bf16.mxu1 %v3765_v41 }
 0x6a3   : > { %v4049_v32 = vadd.f32 %v1018_v31, %v930_v2  ;;  %3231 = vmatprep.mubr.msk.f32.mxu1 %vm259_vm0, %v1039_v27 }
 0x6a4   : > { %3232 = vmatmul.mubr.msk.f32.gmra.mrb[14].mxu1 %vm259_vm0, %v1040_v29  ;;  %v1042_v35 = vmax.f32 %v4047_v30, 0.0 }
 0x6a5   : > { %v1041_v33 = vmax.f32 %v4049_v32, 0.0  ;;  %v3225_v34 = vpop.f32.mrb[18].mxu0 }
 0x6a6   : > { %v4059_v36 = vadd.f32 %v3225_v34, %v930_v2  ;;  %v1028_v37 = vpop.f32.mrb[19].mxu0 }
 0x6a7   : > { %v4061_v38 = vadd.f32 %v1028_v37, %v930_v2  ;;  %3234 = vmatprep.mubr.msk.f32.mxu1 %vm259_vm0, %v1041_v33  ;;  %v1194_v2 = vpop.permute.xlu1 %1193 }
 0x6a8   : > { %3235 = vmatmul.mubr.msk.f32.gmra.mrb[16].mxu1 %vm259_vm0, %v1042_v35  ;;  %v1044_v40 = vmax.f32 %v4059_v36, 0.0 }
 0x6a9   : > { %v1043_v39 = vmax.f32 %v4061_v38, 0.0 }
 0x6ab   : > { %3237 = vmatprep.mubr.msk.f32.mxu1 %vm259_vm0, %v1043_v39 }
 0x6ac   : > { %3238 = vmatmul.mubr.msk.f32.gmra.mrb[18].mxu1 %vm259_vm0, %v1044_v40 }
 0x6ad   : > { %3258 = vmatprep.mubr.msk.f32.mxu1 %vm3766_vm1, %v3767_v42 }
 0x773   : > { %v3230_v44 = vpop.f32.mrb[12].mxu1 }
 0x774   : > { %v1149_v45 = vadd.f32 %v3230_v44, %v1051_v43  ;;  %v1143_v46 = vpop.f32.mrb[13].mxu1 }
 0x775   : > { %v1144_v47 = vadd.f32 %v1143_v46, %v1051_v43 }
 0x776   : > { %v1183_v50 = vmax.f32 %v1149_v45, 0.0 }
 0x777   : > { %v1182_v48 = vmax.f32 %v1144_v47, 0.0  ;;  %v3233_v49 = vpop.f32.mrb[14].mxu1 }
 0x778   : > { %v1159_v51 = vadd.f32 %v3233_v49, %v1051_v43  ;;  %v1153_v52 = vpop.f32.mrb[15].mxu1 }
 0x779   : > { %v1154_v53 = vadd.f32 %v1153_v52, %v1051_v43  ;;  %3242 = vmatprep.mubr.msk.f32.mxu0 %vm259_vm0, %v1182_v48 }
 0x77a   : > { %3243 = vmatmul.mubr.msk.f32.vlgmr.msra.gmra.mrb[20].mxu0 %vm259_vm0, %v1183_v50  ;;  %v1185_v58 = vmax.f32 %v1159_v51, 0.0 }
 0x77b   : > { %v1184_v55 = vmax.f32 %v1154_v53, 0.0  ;;  %v3236_v57 = vpop.f32.mrb[16].mxu1 }
 0x77c   : > { %v1169_v59 = vadd.f32 %v3236_v57, %v1051_v43  ;;  %v1163_v60 = vpop.f32.mrb[17].mxu1 }
 0x77d   : > { %v1164_v1 = vadd.f32 %v1163_v60, %v1051_v43  ;;  %3245 = vmatprep.mubr.msk.f32.mxu0 %vm259_vm0, %v1184_v55 }
 0x77e   : > { %3246 = vmatmul.mubr.msk.f32.gmra.mrb[22].mxu0 %vm259_vm0, %v1185_v58  ;;  %v1187_v63 = vmax.f32 %v1169_v59, 0.0 }
 0x77f   : > { %v1186_v61 = vmax.f32 %v1164_v1, 0.0  ;;  %v3239_v62 = vpop.f32.mrb[18].mxu1 }
 0x780   : > { %v1179_v12 = vadd.f32 %v3239_v62, %v1051_v43  ;;  %v1173_v13 = vpop.f32.mrb[19].mxu1 }
 0x781   : > { %v1174_v14 = vadd.f32 %v1173_v13, %v1051_v43  ;;  %3248 = vmatprep.mubr.msk.f32.mxu0 %vm259_vm0, %v1186_v61 }
 0x782   : > { %3249 = vmatmul.mubr.msk.f32.gmra.mrb[24].mxu0 %vm259_vm0, %v1187_v63  ;;  %v1189_v16 = vmax.f32 %v1179_v12, 0.0 }
 0x783   : > { %v1188_v15 = vmax.f32 %v1174_v14, 0.0 }
 0x785   : > { %3251 = vmatprep.mubr.msk.f32.mxu0 %vm259_vm0, %v1188_v15 }
 0x786   : > { %3252 = vmatmul.mubr.msk.f32.gmra.mrb[26].mxu0 %vm259_vm0, %v1189_v16 }
 0x84d   : > { %v3244_v21 = vpop.f32.mrb[20].mxu0 }
 0x84e   : > { %v1286_v3 = vpop.f32.mrb[21].mxu0  ;;  %v1292_v5 = vadd.f32 %v3244_v21, %v1194_v2  ;;  %v3558_v21 = vpop.permute.xlu1 %3557 }
 0x84f   : > { %v1287_v24 = vadd.f32 %v1286_v3, %v1194_v2  ;;  %v3560_v3 = vunpack.i.h.bf16 %v3558_v21 }
 0x850   : > { %v1326_v28 = vmax.f32 %v1292_v5, 0.0  ;;  %v3559_v5 = vunpack.i.l.bf16 %v3558_v21 }
 0x851   : > { %v3247_v8 = vpop.f32.mrb[22].mxu0  ;;  %v1325_v34 = vmax.f32 %v1287_v24, 0.0 }
 0x852   : > { %v1296_v26 = vpop.f32.mrb[23].mxu0  ;;  %v1302_v37 = vadd.f32 %v3247_v8, %v1194_v2  ;;  %v1334_v11 = vsel %vm541_vm2, %v1326_v28, -inf }
 0x853   : > { %v1297_v45 = vadd.f32 %v1296_v26, %v1194_v2  ;;  %v1333_v49 = vsel %vm541_vm2, %v1325_v34, -inf  ;;  %v3415_v26 = vpack.c.bf16 %v3560_v3, %v3559_v5  ;;  %v1365_v34 = vpop.permute.xlu0 %1364 }
 0x854   : > { %v1328_v50 = vmax.f32 %v1302_v37, 0.0 }
 0x855   : > { %v3250_v31 = vpop.f32.mrb[24].mxu0  ;;  %v1327_v55 = vmax.f32 %v1297_v45, 0.0 }
 0x856   : > { %v1312_v43 = vadd.f32 %v3250_v31, %v1194_v2  ;;  %v1306_v44 = vpop.f32.mrb[25].mxu0  ;;  %v1336_v62 = vsel %vm541_vm2, %v1328_v50, -inf  ;;  %v4107_v31 = vld [vmem:[%s4556_s1 + $0x8] sm:$0xff] }
 0x857   : > { %v1307_v46 = vadd.f32 %v1306_v44, %v1194_v2  ;;  %v1335_v13 = vsel %vm541_vm2, %v1327_v55, -inf  ;;  %1531 = vrot.lane.b32.xlu1 %v4107_v31, %s3777_s9  ;;  %v3561_v23 = vpack.i.bf16 %v1935_v4, %v4107_v31 }
 0x858   : > { %v1330_v47 = vmax.f32 %v1312_v43, 0.0 }
 0x859   : > { %v1329_v48 = vmax.f32 %v1307_v46, 0.0  ;;  %v3253_v9 = vpop.f32.mrb[26].mxu0  ;;  %v1448_v46 = vpop.permute.xlu1 %1447 }
 0x85a   : > { %v1339_v51 = vsel %vm541_vm2, %v1330_v47, -inf  ;;  %v1322_v52 = vadd.f32 %v3253_v9, %v1194_v2  ;;  %v1316_v53 = vpop.f32.mrb[27].mxu0  ;;  %v4119_v9 = vsub.s32 1, %v3980_v54 }
 0x85b   : > { %v1340_v57 = vmax.f32 %v1334_v11, %v1339_v51  ;;  %v1337_v58 = vsel %vm541_vm2, %v1329_v48, -inf  ;;  %v1317_v59 = vadd.f32 %v1316_v53, %v1194_v2  ;;  %v1530_v11 = vpop.permute.xlu0 %1529 }
 0x85c   : > { %v1338_v60 = vmax.f32 %v1333_v49, %v1337_v58  ;;  %v1332_v1 = vmax.f32 %v1322_v52, 0.0  ;;  %v1540_v49 = vrot.slane %v1526_v0, %v3983_v56  ;;  %v1544_v50 = vrot.slane %v1526_v0, %v4119_v9  ;;  %v4244_v0 = vld [vmem:[%s4556_s1 + $0x68] sm:$0xff] }
 0x85d   : > { %v1331_v61 = vmax.f32 %v1317_v59, 0.0 }
 0x85e   : > { %v1345_v63 = vmax.f32 %v1338_v60, %v1340_v57  ;;  %v1343_v12 = vsel %vm541_vm2, %v1332_v1, -inf  ;;  %1545 = vrot.lane.b32.xlu0 %v1540_v49, %s3777_s9  ;;  %1547 = vrot.lane.b32.xlu1 %v1544_v50, %s3777_s9  ;;  %v2104_v50 = vld [vmem:[%s4556_s1 + $0x88] sm:$0xff]  ;;  %s3782_s9 = smov 31  }
 0x85f   : > { %v1344_v14 = vmax.f32 %v1336_v62, %v1343_v12  ;;  %v1341_v15 = vsel %vm541_vm2, %v1331_v61, -inf }
 0x860   : > { %v1342_v16 = vmax.f32 %v1335_v13, %v1341_v15 }
 0x862   : > { %v1346_v17 = vmax.f32 %v1342_v16, %v1344_v14 }
 0x864   : > { %v1347_v18 = vmax.f32 %v1345_v63, %v1346_v17 }
 0x866   : > { %v1348_v19 = vrot.slane %v1347_v18, 4 }
 0x868   : > { %v1349_v20 = vmax.f32 %v1347_v18, %v1348_v19 }
 0x86a   : > { %v1350_v2 = vrot.slane %v1349_v20, 2 }
 0x86c   : > { %v1351_v8 = vmax.f32 %v1349_v20, %v1350_v2 }
 0x86e   : > { %v1352_v24 = vrot.slane %v1351_v8, 1 }
 0x870   : > { %v1353_v28 = vmax.f32 %v1351_v8, %v1352_v24 }
 0x872   : > { %3259 = vmatmul.mubr.msk.f32.vlgmr.msra.gmra.mrb[20].mxu1 %vm541_vm2, %v1353_v28 }
 0x873   : > { %3416 = vmatpush3.bf16.msra.mxu1 %v3415_v26  ;;  %3265 = vmatprep.mubr.msk.f32.mxu1 %vm3766_vm1, %v3767_v42 }
 0x874   : > { %3268 = vmatprep.subr.mxu1 %v3767_v42 }
 0x8c9   : > { %v1532_v47 = vpop.permute.xlu1 %1531 }
 0x8ca   : > { %v1534_v48 = vsel %vm1533_vm10, %v1530_v11, %v1532_v47  ;;  %v4236_v11 = vld [vmem:[%s4556_s1 + $0x40] sm:$0xff] }
 0x8d0   : > { %v1548_v57 = vpop.permute.xlu1 %1547  ;;  %v1546_v58 = vpop.permute.xlu0 %1545 }
 0x8d1   : > { %v1549_v59 = vsel %vm1533_vm10, %v1546_v58, %v1548_v57 }
 0x945   : > { %v1436_v37 = vpop.f32.mrb[20].mxu1 }
 0x946   : > { %v1437_v43 = vadd.f32 %v1436_v37, %v1365_v34  ;;  %v3260_v44 = vpop.f32.mrb[21].mxu1 }
 0x947   : > { %v2098_v44 = vld [vmem:[%s4556_s1 + $0x10] sm:$0xff] }
 0x948   : > { %v1440_v45 = vmax.f32 %v1437_v43, 0.0 }
 0x94a   : > { %3266 = vmatmul.mubr.msk.f32.vlgmr.msra.gmra.mrb[22].mxu1 %vm541_vm2, %v1440_v45  ;;  %v4227_v45 = vld [vmem:[%s4556_s1 + $0x18] sm:$0xff] }
 0x94b   : > { %3270 = vmatprep.mubr.msk.f32.mxu1 %vm3766_vm1, %v3767_v42  ;;  %3269 = vmatpush3.msra.mxu1 %v1534_v48  ;;  %v3566_v47 = vpack.i.bf16 %v4227_v45, %v2098_v44  ;;  %v2102_v48 = vld [vmem:[%s4556_s1 + $0x60] sm:$0xff] }
 0xa1d   : > { %v1519_v51 = vpop.f32.mrb[22].mxu1 }
 0xa1e   : > { %v1520_v52 = vadd.f32 %v1519_v51, %v1448_v46  ;;  %v3267_v53 = vpop.f32.mrb[23].mxu1  ;;  %v2100_v46 = vld [vmem:[%s4556_s1 + $0x38] sm:$0xff]  ;;  %v4253_v51 = vld [vmem:[%s4556_s1 + $0x90] sm:$0xff] }
 0xa1f   : > { %v3571_v49 = vpack.i.bf16 %v4236_v11, %v2100_v46  ;;  %v3581_v53 = vpack.i.bf16 %v4253_v51, %v2104_v50 }
 0xa20   : > { %v1523_v55 = vmax.f32 %v1520_v52, 0.0  ;;  %v3576_v52 = vpack.i.bf16 %v4244_v0, %v2102_v48 }
 0xa22   : > { %3271 = vmatmul.mubr.msk.f32.vlgmr.msra.gmra.mrb[24].mxu1 %vm259_vm0, %v1523_v55 }
 0xa23   : > { %3275 = vmatprep.mubr.msk.f32.mxu1 %vm259_vm0, %v1037_v7 }
 0xaf5   : > { %v1620_v60 = vpop.f32.mrb[24].mxu1 }
 0xaf6   : > { %v1621_v1 = vadd.f32 %v1620_v60, %v1549_v59  ;;  %v3272_v61 = vpop.f32.mrb[25].mxu1 }
 0xaf8   : > { %v1627_v62 = vrot.slane %v1621_v1, %v3983_v56 }
 0xafa   : > { %v1636_v63 = vsel %vm833_vm3, %v1627_v62, 0.0  ;;  %v1630_v12 = vsel %vm826_vm4, %v1627_v62, 0.0  ;;  %v1650_v6 = vsel %vm1649_vm11, %v1627_v62, 0.0  ;;  %v1643_v7 = vsel %vm1642_vm12, %v1627_v62, 0.0 }
 0xafb   : > { %1638 = vrot.lane.b32.xlu1 %v1636_v63, %s3778_s12  ;;  %1632 = vrot.lane.b32.xlu0 %v1630_v12, %s3763_s7  ;;  %v1664_v13 = vsel %vm1663_vm13, %v1627_v62, 0.0  ;;  %v1657_v14 = vsel %vm1656_vm14, %v1627_v62, 0.0  ;;  %v1671_v15 = vsel %vm1670_vm15, %v1627_v62, 0.0  ;;  %s3780_s7 = smov 72   ;;  %v1628_v16 = vsel %vm823_vm6, %v1627_v62, 0.0 }
 0xafc   : > { %v1629_v17 = vadd.f32 %v3999_v10, %v1628_v16  ;;  %vm2130_vm3 = vcmask 252928  }
 0xaff   : > { %1652 = vrot.lane.b32.xlu1 %v1650_v6, %s3779_s13  ;;  %1645 = vrot.lane.b32.xlu0 %v1643_v7, %s3764_s17  ;;  %s4148_s17 = sand.u32 1, %s3753_s19   ;;  %s4486_s13 = scalar_lea.hbm %s4560_s5, %s3018_s6 }
 0xb03   : > { %1666 = vrot.lane.b32.xlu1 %v1664_v13, %s3769_s25  ;;  %1659 = vrot.lane.b32.xlu0 %v1657_v14, %s3768_s23  ;;  %s2918_s23 = sshll.u32 %s4148_s17, 3 }
 0xb04   : > { %s4151_s25 = scalar_lea.vmem [#allocation4], %s2918_s23  ;;  %s3785_s23 = smov [#allocation4]  }
 0xb05   : > { %s2803_s10 = sshll.u32 %s4151_s25, 4  ;;  %s3671_s8 = sshll.u32 %s3785_s23, 4  ;;  %s2804_s10 = int_to_ptr.vmem [resolvable:$true] %s2803_s10  ;;  %s3672_s8 = int_to_ptr.vmem [resolvable:$false] %s3671_s8 }
 0xb06   : > { %s3673_s16 = scalar_lea.vmem %s3672_s8, 256  ;;  %p3674_p0 = scmp.lt.s32.totalorder %s2804_s10, %s3672_s8 }
 0xb07   : > { %1673 = vrot.lane.b32.xlu0 %v1671_v15, %s3780_s7  ;;  %1791 = vrot.lane.b32.xlu1 %v4107_v31, %s3781_s14  ;;  %s2774_s7 = scalar_lea.sflag [#allocation5], %s4148_s17 }
 0xb0b   : > { %3562 = vrot.lane.b32.xlu0 %v3561_v23, %s3773_s15 }
 0xb6d   : > { %v1639_v18 = vpop.permute.xlu1 %1638  ;;  %v1633_v19 = vpop.permute.xlu0 %1632 }
 0xb6e   : > { %v1635_v20 = vadd.f32 %v1633_v19, %v1629_v17 }
 0xb70   : > { %v1641_v21 = vadd.f32 %v1639_v18, %v1635_v20 }
 0xb71   : > { %v1653_v2 = vpop.permute.xlu1 %1652  ;;  %v1646_v3 = vpop.permute.xlu0 %1645 }
 0xb72   : > { %v1648_v5 = vadd.f32 %v1646_v3, %v1641_v21 }
 0xb74   : > { %v1655_v8 = vadd.f32 %v1653_v2, %v1648_v5 }
 0xb75   : > { %v1660_v24 = vpop.permute.xlu0 %1659  ;;  %v1667_v28 = vpop.permute.xlu1 %1666 }
 0xb76   : > { %v1662_v26 = vadd.f32 %v1660_v24, %v1655_v8 }
 0xb78   : > { %v1669_v34 = vadd.f32 %v1667_v28, %v1662_v26 }
 0xb79   : > { %v1674_v54 = vpop.permute.xlu0 %1673  ;;  %v1792_v10 = vpop.permute.xlu1 %1791 }
 0xb7a   : > { %v1676_v37 = vadd.f32 %v1674_v54, %v1669_v34  ;;  %3287 = vmatprep.subr.mxu0 %v1792_v10 }
 0xb7b   : > { %3288 = vmatpush3.msra.mxu0 %v1792_v10 }
 0xb7c   : > { %3273 = vmatprep.subr.mxu1 %v1676_v37  ;;  %1677 = vst.msk [vmem:[%s4151_s25] sm:$0xff] %vm259_vm0, %v1676_v37  ;;  %3421 = vmatprep.subr.bf16.mxu0 %v3765_v41 }
 0xb7d   : > { %3274 = vmatpush3.msra.mxu1 %v1676_v37  ;;  %v3563_v30 = vpop.permute.xlu0 %3562 }
 0xb7e   : > { %3276 = vmatmul.mubr.msk.f32.vlgmr.msra.gmra.mrb[26].mxu1 %vm259_vm0, %v1038_v22  ;;  %v2981_v22 = vld [vmem:[%s4557_s2 + $0x1] ss:$0 sm:$0xff] }
 0xb7f   : > { %3278 = vmatprep.mubr.msk.f32.mxu1 %vm259_vm0, %v1039_v27  ;;  %1794 = vrot.lane.b32.xlu1 %v2981_v22, %s3781_s14  ;;  %s3667_s14 = scalar_lea.vmem %s2804_s10, 128 }
 0xb80   : > { %1944 = vrot.lane.b32.xlu0 %v2981_v22, %s3773_s15  ;;  %p3668_p11 = scmp.ne.s32.totalorder %s2804_s10, %s3667_s14  ;;  %p3675_p1 = scmp.lt.s32.totalorder %s3673_s16, %s3667_s14 }
 0xb82   : > { %3279 = vmatmul.mubr.msk.f32.gmra.mrb[28].mxu1 %vm259_vm0, %v1040_v29  ;;  %p3669_p12 = pnand %p3668_p11, %p3855_p5  ;;  %p3676_p2 = por %p3675_p1, %p3674_p0 }
 0xb83   : > { %3281 = vmatprep.mubr.msk.f32.mxu1 %vm259_vm0, %v1041_v33  ;;  %v3565_v33 = vunpack.i.h.bf16 %v3563_v30  ;;  %3567 = vrot.lane.b32.xlu1 %v3566_v47, %s3782_s9 }
 0xb84   : > { %3572 = vrot.lane.b32.xlu0 %v3571_v49, %s3782_s9  ;;  %p3670_p13 = pneg %p3669_p12 }
 0xb86   : > { %3282 = vmatmul.mubr.msk.f32.gmra.mrb[30].mxu1 %vm259_vm0, %v1042_v35  ;;  %v3564_v35 = vunpack.i.l.bf16 %v3563_v30  ;;  %p3677_p3 = pnand %p3676_p2, %p3670_p13 }
 0xb87   : > { %3284 = vmatprep.mubr.msk.f32.mxu1 %vm259_vm0, %v1043_v39  ;;  %3577 = vrot.lane.b32.xlu1 %v3576_v52, %s3782_s9 }
 0xb88   : > { %v3417_v36 = vpack.c.bf16 %v3565_v33, %v3564_v35  ;;  %3582 = vrot.lane.b32.xlu0 %v3581_v53, %s3782_s9  ;;  %v2364_v53 = vld [vmem:[%s4556_s1 + $0x20] sm:$0xff] }
 0xb8a   : > { %3285 = vmatmul.mubr.msk.f32.gmra.mrb[32].mxu1 %vm259_vm0, %v1044_v40  ;;  %3418 = vmatprep.subr.bf16.mxu1 %v3417_v36 }
 0xb8b   : > { %3420 = vmatpush3.bf16.msra.mxu1 %v3417_v36  ;;  %2220 = vrot.lane.b32.xlu1 %v4107_v31, %s3782_s9 }
 0xb8c   : > { %2222 = vrot.lane.b32.xlu0 %v2098_v44, %s3782_s9 }
 0xbf1   : > { %v1795_v55 = vpop.permute.xlu1 %1794 }
 0xbf2   : > { %v4272_v8 = vpop.permute.xlu0 %1944 }
 0xbf5   : > { %v3568_v24 = vpop.permute.xlu1 %3567 }
 0xbf6   : > { %v3573_v26 = vpop.permute.xlu0 %3572  ;;  %v3570_v28 = vunpack.i.h.bf16 %v3568_v24  ;;  %v3569_v34 = vunpack.i.l.bf16 %v3568_v24 }
 0xbf7   : > { %v3575_v54 = vunpack.i.h.bf16 %v3573_v26  ;;  %v3574_v37 = vunpack.i.l.bf16 %v3573_v26 }
 0xbf8   : > { %v2131_v10 = vsel %vm2130_vm3, %v3569_v34, %v3570_v28  ;;  %v2387_v28 = vld [vmem:[%s4556_s1 + $0x1f8] sm:$0xff]  ;;  %v2388_v34 = vld [vmem:[%s4556_s1 + $0x200] sm:$0xff] }
 0xbf9   : > { %v2132_v4 = vsel %vm2130_vm3, %v3574_v37, %v3575_v54  ;;  %v3578_v23 = vpop.permute.xlu1 %3577  ;;  %v2389_v54 = vld [vmem:[%s4556_s1 + $0x220] sm:$0xff]  ;;  %v2390_v37 = vld [vmem:[%s4556_s1 + $0x228] sm:$0xff] }
 0xbfa   : > { %v3422_v22 = vpack.c.bf16 %v2132_v4, %v2131_v10  ;;  %v3583_v30 = vpop.permute.xlu0 %3582  ;;  %v3580_v33 = vunpack.i.h.bf16 %v3578_v23  ;;  %v3579_v35 = vunpack.i.l.bf16 %v3578_v23  ;;  %v3646_v10 = vpack.i.bf16 %v2388_v34, %v2387_v28  ;;  %v2392_v23 = vld [vmem:[%s4556_s1 + $0x250] sm:$0xff] }
 0xbfb   : > { %v3585_v36 = vunpack.i.h.bf16 %v3583_v30  ;;  %v3584_v44 = vunpack.i.l.bf16 %v3583_v30  ;;  %v3651_v4 = vpack.i.bf16 %v2390_v37, %v2389_v54  ;;  %v2393_v30 = vld [vmem:[%s4556_s1 + $0x270] sm:$0xff] }
 0xbfc   : > { %v2133_v46 = vsel %vm2130_vm3, %v3579_v35, %v3580_v33  ;;  %v2394_v33 = vld [vmem:[%s4556_s1 + $0x278] sm:$0xff] }
 0xbfd   : > { %v2134_v47 = vsel %vm2130_vm3, %v3584_v44, %v3585_v36  ;;  %v2221_v49 = vpop.permute.xlu1 %2220  ;;  %v3661_v36 = vpack.i.bf16 %v2394_v33, %v2393_v30  ;;  %v2331_v44 = vld [vmem:[%s4557_s2 + $0x1] sm:$0x3] }
 0xbfe   : > { %v3425_v48 = vpack.c.bf16 %v2134_v47, %v2133_v46  ;;  %v2223_v50 = vpop.permute.xlu0 %2222  ;;  %v2336_v46 = vrot.slane %v2331_v44, %v3983_v56  ;;  %v2340_v47 = vrot.slane %v2331_v44, %v4119_v9 }
 0xbff   : > { %v4280_v52 = vsel %vm2130_vm3, %v2221_v49, %v2223_v50 }
 0xc51   : > { %v4187_v25 = vpop.f32.mrb[26].mxu1 }
 0xc52   : > { %v4189_v27 = vpop.f32.mrb[27].mxu1 }
 0xc53   : > { %3289 = vmatprep.mubr.msk.f32.mxu0 %vm259_vm0, %v4189_v27 }
 0xc54   : > { %3290 = vmatmul.mubr.msk.f32.vlgmr.msra.gmra.mrb[28].mxu0 %vm259_vm0, %v4187_v25 }
 0xc55   : > { %v4195_v29 = vpop.f32.mrb[28].mxu1  ;;  %3423 = vmatpush3.bf16.msra.mxu0 %v3422_v22  ;;  %v2391_v22 = vld [vmem:[%s4556_s1 + $0x248] sm:$0xff] }
 0xc56   : > { %v4197_v32 = vpop.f32.mrb[29].mxu1  ;;  %3424 = vmatprep.subr.bf16.mxu0 %v3765_v41  ;;  %v3656_v35 = vpack.i.bf16 %v2392_v23, %v2391_v22 }
 0xc57   : > { %3292 = vmatprep.mubr.msk.f32.mxu0 %vm259_vm0, %v4197_v32 }
 0xc58   : > { %3293 = vmatmul.mubr.msk.f32.gmra.mrb[30].mxu0 %vm259_vm0, %v4195_v29 }
 0xc59   : > { %v4203_v38 = vpop.f32.mrb[30].mxu1  ;;  %3426 = vmatpush3.bf16.msra.mxu0 %v3425_v48 }
 0xc5a   : > { %v4205_v39 = vpop.f32.mrb[31].mxu1  ;;  %3328 = vmatprep.subr.mxu0 %v4280_v52 }
 0xc5b   : > { %3295 = vmatprep.mubr.msk.f32.mxu0 %vm259_vm0, %v4205_v39 }
 0xc5c   : > { %3296 = vmatmul.mubr.msk.f32.gmra.mrb[32].mxu0 %vm259_vm0, %v4203_v38 }
 0xc5d   : > { %v4211_v40 = vpop.f32.mrb[32].mxu1 }
 0xc5e   : > { %v4213_v43 = vpop.f32.mrb[33].mxu1 }
 0xc5f   : > { %3298 = vmatprep.mubr.msk.f32.mxu0 %vm259_vm0, %v4213_v43 }
 0xc60   : > { %3299 = vmatmul.mubr.msk.f32.gmra.mrb[34].mxu0 %vm259_vm0, %v4211_v40 }
 0xc61   : > { %3325 = vmatprep.mubr.msk.f32.mxu0 %vm3766_vm1, %v3767_v42 }
 0xd27   : > { %v3291_v57 = vpop.f32.mrb[28].mxu0 }
 0xd28   : > { %v1893_v58 = vadd.f32 %v3291_v57, %v1795_v55  ;;  %v1887_v59 = vpop.f32.mrb[29].mxu0  ;;  %v2368_v57 = vld [vmem:[%s4556_s1 + $0x70] sm:$0xff] }
 0xd29   : > { %v1888_v60 = vadd.f32 %v1887_v59, %v1795_v55 }
 0xd2a   : > { %v1927_v62 = vmax.f32 %v1893_v58, 0.0  ;;  %v3586_v58 = vpack.i.bf16 %v2364_v53, %v4227_v45  ;;  %v2372_v45 = vld [vmem:[%s4556_s1 + $0xc0] sm:$0xff] }
 0xd2b   : > { %v1926_v1 = vmax.f32 %v1888_v60, 0.0  ;;  %v3294_v61 = vpop.f32.mrb[30].mxu0  ;;  %v2370_v60 = vld [vmem:[%s4556_s1 + $0x98] sm:$0xff] }
 0xd2c   : > { %v1903_v63 = vadd.f32 %v3294_v61, %v1795_v55  ;;  %v1897_v12 = vpop.f32.mrb[31].mxu0  ;;  %3587 = vrot.lane.b32.xlu1 %v3586_v58, %s3782_s9  ;;  %v3601_v61 = vpack.i.bf16 %v2370_v60, %v4253_v51 }
 0xd2d   : > { %v1898_v6 = vadd.f32 %v1897_v12, %v1795_v55  ;;  %3305 = vmatprep.mubr.msk.f32.mxu1 %vm541_vm2, %v1926_v1  ;;  %v3596_v1 = vpack.i.bf16 %v2368_v57, %v4244_v0  ;;  %v2375_v12 = vld [vmem:[%s4556_s1 + $0x108] sm:$0xff] }
 0xd2e   : > { %3306 = vmatmul.mubr.msk.f32.vlgmr.msra.gmra.mrb[34].mxu1 %vm541_vm2, %v1927_v62  ;;  %v1929_v31 = vmax.f32 %v1903_v63, 0.0  ;;  %v2371_v62 = vld [vmem:[%s4556_s1 + $0xb8] sm:$0xff]  ;;  %v2374_v63 = vld [vmem:[%s4556_s1 + $0xe8] sm:$0xff] }
 0xd2f   : > { %v1928_v7 = vmax.f32 %v1898_v6, 0.0  ;;  %v3297_v13 = vpop.f32.mrb[32].mxu0  ;;  %v3606_v0 = vpack.i.bf16 %v2372_v45, %v2371_v62  ;;  %v2376_v6 = vld [vmem:[%s4556_s1 + $0x110] sm:$0xff] }
 0xd30   : > { %v1913_v14 = vadd.f32 %v3297_v13, %v1795_v55  ;;  %v1907_v15 = vpop.f32.mrb[33].mxu0  ;;  %3597 = vrot.lane.b32.xlu1 %v3596_v1, %s3782_s9  ;;  %v2378_v13 = vld [vmem:[%s4556_s1 + $0x138] sm:$0xff] }
 0xd31   : > { %v1908_v16 = vadd.f32 %v1907_v15, %v1795_v55  ;;  %3308 = vmatprep.mubr.msk.f32.mxu1 %vm541_vm2, %v1928_v7  ;;  %v2377_v7 = vld [vmem:[%s4556_s1 + $0x130] sm:$0xff]  ;;  %v2379_v15 = vld [vmem:[%s4556_s1 + $0x158] sm:$0xff] }
 0xd32   : > { %3309 = vmatmul.mubr.msk.f32.gmra.mrb[36].mxu1 %vm541_vm2, %v1929_v31  ;;  %v1931_v19 = vmax.f32 %v1913_v14, 0.0  ;;  %v3616_v31 = vpack.i.bf16 %v2376_v6, %v2375_v12  ;;  %v3621_v14 = vpack.i.bf16 %v2378_v13, %v2377_v7 }
 0xd33   : > { %v1930_v17 = vmax.f32 %v1908_v16, 0.0  ;;  %v3300_v18 = vpop.f32.mrb[34].mxu0  ;;  %v2380_v16 = vld [vmem:[%s4556_s1 + $0x160] sm:$0xff] }
 0xd34   : > { %v1923_v20 = vadd.f32 %v3300_v18, %v1795_v55  ;;  %v1917_v21 = vpop.f32.mrb[35].mxu0  ;;  %3607 = vrot.lane.b32.xlu1 %v3606_v0, %s3782_s9  ;;  %v2382_v18 = vld [vmem:[%s4556_s1 + $0x188] sm:$0xff] }
 0xd35   : > { %v1918_v2 = vadd.f32 %v1917_v21, %v1795_v55  ;;  %3311 = vmatprep.mubr.msk.f32.mxu1 %vm541_vm2, %v1930_v17  ;;  %v2366_v55 = vld [vmem:[%s4556_s1 + $0x48] sm:$0xff]  ;;  %v2381_v17 = vld [vmem:[%s4556_s1 + $0x180] sm:$0xff] }
 0xd36   : > { %3312 = vmatmul.mubr.msk.f32.gmra.mrb[38].mxu1 %vm541_vm2, %v1931_v19  ;;  %v1933_v5 = vmax.f32 %v1923_v20, 0.0  ;;  %v3591_v59 = vpack.i.bf16 %v2366_v55, %v4236_v11  ;;  %v2373_v11 = vld [vmem:[%s4556_s1 + $0xe0] sm:$0xff]  ;;  %v3626_v19 = vpack.i.bf16 %v2380_v16, %v2379_v15  ;;  %v3631_v20 = vpack.i.bf16 %v2382_v18, %v2381_v17  ;;  %v2383_v21 = vld [vmem:[%s4556_s1 + $0x1a8] sm:$0xff] }
 0xd37   : > { %v1932_v3 = vmax.f32 %v1918_v2, 0.0  ;;  %v3611_v51 = vpack.i.bf16 %v2374_v63, %v2373_v11  ;;  %v2384_v2 = vld [vmem:[%s4556_s1 + $0x1b0] sm:$0xff] }
 0xd38   : > { %3592 = vrot.lane.b32.xlu0 %v3591_v59, %s3782_s9  ;;  %3617 = vrot.lane.b32.xlu1 %v3616_v31, %s3782_s9  ;;  %v3636_v24 = vpack.i.bf16 %v2384_v2, %v2383_v21 }
 0xd39   : > { %3314 = vmatprep.mubr.msk.f32.mxu1 %vm541_vm2, %v1932_v3  ;;  %v2385_v3 = vld [vmem:[%s4556_s1 + $0x1d0] sm:$0xff] }
 0xd3a   : > { %3315 = vmatmul.mubr.msk.f32.gmra.mrb[40].mxu1 %vm541_vm2, %v1933_v5  ;;  %v2386_v5 = vld [vmem:[%s4556_s1 + $0x1d8] sm:$0xff]  ;;  %vm2076_vm2 = vcmask 261120  }
 0xd3b   : > { %v3641_v26 = vpack.i.bf16 %v2386_v5, %v2385_v3 }
 0xd3c   : > { %3602 = vrot.lane.b32.xlu0 %v3601_v61, %s3782_s9  ;;  %3627 = vrot.lane.b32.xlu1 %v3626_v19, %s3782_s9 }
 0xd40   : > { %3612 = vrot.lane.b32.xlu0 %v3611_v51, %s3782_s9  ;;  %3637 = vrot.lane.b32.xlu1 %v3636_v24, %s3782_s9 }
 0xd44   : > { %3622 = vrot.lane.b32.xlu0 %v3621_v14, %s3782_s9  ;;  %3647 = vrot.lane.b32.xlu1 %v3646_v10, %s3782_s9 }
 0xd48   : > { %3632 = vrot.lane.b32.xlu0 %v3631_v20, %s3782_s9  ;;  %3657 = vrot.lane.b32.xlu1 %v3656_v35, %s3782_s9 }
 0xd4c   : > { %3642 = vrot.lane.b32.xlu0 %v3641_v26, %s3782_s9  ;;  %2341 = vrot.lane.b32.xlu1 %v2336_v46, %s3782_s9 }
 0xd50   : > { %3652 = vrot.lane.b32.xlu0 %v3651_v4, %s3782_s9 }
 0xd54   : > { %3662 = vrot.lane.b32.xlu0 %v3661_v36, %s3782_s9 }
 0xd58   : > { %2343 = vrot.lane.b32.xlu0 %v2340_v47, %s3782_s9 }
 0xdaa   : > { %v3593_v54 = vpop.permute.xlu0 %3592 }
 0xdab   : > { %v3595_v4 = vunpack.i.h.bf16 %v3593_v54  ;;  %v3594_v22 = vunpack.i.l.bf16 %v3593_v54 }
 0xdae   : > { %v3603_v23 = vpop.permute.xlu0 %3602 }
 0xdaf   : > { %v3605_v35 = vunpack.i.h.bf16 %v3603_v23  ;;  %v3604_v36 = vunpack.i.l.bf16 %v3603_v23 }
 0xdb1   : > { %v2504_v44 = vsel %vm2130_vm3, %v3604_v36, %v3605_v35  ;;  %v2652_v36 = vld [vmem:[%s4556_s1 + $0x20] ss:$0 sm:$0xff] }
 0xdb2   : > { %v3613_v46 = vpop.permute.xlu0 %3612 }
 0xe01   : > { %v3307_v48 = vpop.f32.mrb[34].mxu1 }
 0xe02   : > { %v2037_v49 = vpop.f32.mrb[35].mxu1  ;;  %v2043_v55 = vadd.f32 %v3307_v48, %v4272_v8 }
 0xe03   : > { %v2038_v57 = vadd.f32 %v2037_v49, %v4272_v8 }
 0xe04   : > { %v2078_v61 = vsel %vm2076_vm2, %v2043_v55, -inf }
 0xe05   : > { %v3310_v50 = vpop.f32.mrb[36].mxu1  ;;  %v2077_v11 = vsel %vm2076_vm2, %v2038_v57, -inf }
 0xe06   : > { %v2047_v53 = vpop.f32.mrb[37].mxu1  ;;  %v2053_v62 = vadd.f32 %v3310_v50, %v4272_v8  ;;  %v3615_v50 = vunpack.i.h.bf16 %v3613_v46 }
 0xe07   : > { %v2048_v63 = vadd.f32 %v2047_v53, %v4272_v8  ;;  %v3614_v53 = vunpack.i.l.bf16 %v3613_v46 }
 0xe08   : > { %v2080_v14 = vsel %vm2076_vm2, %v2053_v62, -inf }
 0xe09   : > { %v3313_v58 = vpop.f32.mrb[38].mxu1  ;;  %v2079_v17 = vsel %vm2076_vm2, %v2048_v63, -inf  ;;  %v2506_v55 = vsel %vm2130_vm3, %v3614_v53, %v3615_v50 }
 0xe0a   : > { %v2063_v59 = vadd.f32 %v3313_v58, %v4272_v8  ;;  %v2057_v60 = vpop.f32.mrb[39].mxu1  ;;  %v3623_v58 = vpop.permute.xlu0 %3622 }
 0xe0b   : > { %v2058_v1 = vadd.f32 %v2057_v60, %v4272_v8 }
 0xe0c   : > { %v2083_v45 = vsel %vm2076_vm2, %v2063_v59, -inf }
 0xe0d   : > { %v2084_v0 = vmax.f32 %v2078_v61, %v2083_v45  ;;  %v2081_v51 = vsel %vm2076_vm2, %v2058_v1, -inf  ;;  %v3316_v12 = vpop.f32.mrb[40].mxu1  ;;  %v3625_v1 = vunpack.i.h.bf16 %v3623_v58  ;;  %v3624_v61 = vunpack.i.l.bf16 %v3623_v58 }
 0xe0e   : > { %v2082_v6 = vmax.f32 %v2077_v11, %v2081_v51  ;;  %v2073_v7 = vadd.f32 %v3316_v12, %v4272_v8  ;;  %v2067_v13 = vpop.f32.mrb[41].mxu1  ;;  %v3633_v11 = vpop.permute.xlu0 %3632 }
 0xe0f   : > { %v2068_v31 = vadd.f32 %v2067_v13, %v4272_v8  ;;  %v3588_v8 = vpop.permute.xlu1 %3587  ;;  %v3635_v12 = vunpack.i.h.bf16 %v3633_v11 }
 0xe10   : > { %v2089_v15 = vmax.f32 %v2082_v6, %v2084_v0  ;;  %v2087_v16 = vsel %vm2076_vm2, %v2073_v7, -inf  ;;  %v3590_v37 = vunpack.i.h.bf16 %v3588_v8  ;;  %v3589_v10 = vunpack.i.l.bf16 %v3588_v8 }
 0xe11   : > { %v2088_v18 = vmax.f32 %v2080_v14, %v2087_v16  ;;  %v2085_v19 = vsel %vm2076_vm2, %v2068_v31, -inf  ;;  %v3634_v6 = vunpack.i.l.bf16 %v3633_v11 }
 0xe12   : > { %v2086_v20 = vmax.f32 %v2079_v17, %v2085_v19  ;;  %v3643_v14 = vpop.permute.xlu0 %3642 }
 0xe13   : > { %v2510_v7 = vsel %vm2130_vm3, %v3634_v6, %v3635_v12  ;;  %v3645_v17 = vunpack.i.h.bf16 %v3643_v14 }
 0xe14   : > { %v2090_v21 = vmax.f32 %v2086_v20, %v2088_v18  ;;  %v3644_v18 = vunpack.i.l.bf16 %v3643_v14 }
 0xe16   : > { %v2091_v2 = vmax.f32 %v2089_v15, %v2090_v21  ;;  %v3653_v20 = vpop.permute.xlu0 %3652 }
 0xe18   : > { %v2092_v3 = vrot.slane %v2091_v2, 4 }
 0xe1a   : > { %v2093_v5 = vmax.f32 %v2091_v2, %v2092_v3  ;;  %v3655_v3 = vunpack.i.h.bf16 %v3653_v20  ;;  %v3663_v8 = vpop.permute.xlu0 %3662 }
 0xe1c   : > { %v2094_v24 = vrot.slane %v2093_v5, 2 }
 0xe1e   : > { %v2095_v26 = vmax.f32 %v2093_v5, %v2094_v24  ;;  %v3654_v5 = vunpack.i.l.bf16 %v3653_v20  ;;  %v2344_v46 = vpop.permute.xlu0 %2343  ;;  %v2653_v20 = vld [vmem:[%s4557_s2 + $0x3] sm:$0x1] }
 0xe20   : > { %v2096_v28 = vrot.slane %v2095_v26, 1 }
 0xe22   : > { %v2097_v34 = vmax.f32 %v2095_v26, %v2096_v28  ;;  %v2512_v26 = vsel %vm2130_vm3, %v3644_v18, %v3645_v17 }
 0xe24   : > { %3326 = vmatmul.mubr.msk.f32.vlgmr.msra.gmra.mrb[36].mxu0 %vm2076_vm2, %v2097_v34 }
 0xe25   : > { %3330 = vmatprep.mubr.msk.f32.mxu0 %vm259_vm0, %v4189_v27  ;;  %3329 = vmatpush3.msra.mxu0 %v4280_v52  ;;  %v2501_v27 = vsel %vm2130_vm3, %v3589_v10, %v3590_v37  ;;  %v2502_v52 = vsel %vm2130_vm3, %v3594_v22, %v3595_v4  ;;  %v2514_v37 = vsel %vm2130_vm3, %v3654_v5, %v3655_v3  ;;  %v3665_v22 = vunpack.i.h.bf16 %v3663_v8 }
 0xe26   : > { %3459 = vmatprep.subr.bf16.mxu0 %v3765_v41  ;;  %v3427_v30 = vpack.c.bf16 %v2502_v52, %v2501_v27  ;;  %v3664_v27 = vunpack.i.l.bf16 %v3663_v8 }
 0xe28   : > { %3331 = vmatmul.mubr.msk.f32.vlgmr.msra.gmra.mrb[38].mxu0 %vm259_vm0, %v4187_v25  ;;  %v3598_v25 = vpop.permute.xlu1 %3597  ;;  %3428 = vmatprep.subr.bf16.mxu1 %v3427_v30  ;;  %v2516_v23 = vsel %vm2130_vm3, %v3664_v27, %v3665_v22 }
 0xe29   : > { %3333 = vmatprep.mubr.msk.f32.mxu0 %vm259_vm0, %v4197_v32  ;;  %v3600_v32 = vunpack.i.h.bf16 %v3598_v25  ;;  %v3599_v33 = vunpack.i.l.bf16 %v3598_v25  ;;  %3430 = vmatpush3.bf16.msra.mxu1 %v3427_v30 }
 0xe2c   : > { %3334 = vmatmul.mubr.msk.f32.gmra.mrb[40].mxu0 %vm259_vm0, %v4195_v29  ;;  %v2503_v29 = vsel %vm2130_vm3, %v3599_v33, %v3600_v32  ;;  %v2395_v32 = vld [vmem:[%s4557_s2 + $0x2] sm:$0x3] }
 0xe2d   : > { %3336 = vmatprep.mubr.msk.f32.mxu0 %vm259_vm0, %v4205_v39  ;;  %v3608_v39 = vpop.permute.xlu1 %3607  ;;  %v3431_v47 = vpack.c.bf16 %v2504_v44, %v2503_v29  ;;  %v2400_v33 = vrot.slane %v2395_v32, %v3983_v56  ;;  %v2404_v35 = vrot.slane %v2395_v32, %v4119_v9 }
 0xe2e   : > { %v3610_v48 = vunpack.i.h.bf16 %v3608_v39  ;;  %v3609_v49 = vunpack.i.l.bf16 %v3608_v39 }
 0xe2f   : > { %3432 = vmatprep.subr.bf16.mxu1 %v3431_v47  ;;  %2533 = vrot.lane.b32.xlu1 %v2400_v33, %s3782_s9 }
 0xe30   : > { %3337 = vmatmul.mubr.msk.f32.gmra.mrb[42].mxu0 %vm259_vm0, %v4203_v38  ;;  %3434 = vmatpush3.bf16.msra.mxu1 %v3431_v47  ;;  %v2505_v38 = vsel %vm2130_vm3, %v3609_v49, %v3610_v48 }
 0xe31   : > { %3339 = vmatprep.mubr.msk.f32.mxu0 %vm259_vm0, %v4213_v43  ;;  %v3618_v57 = vpop.permute.xlu1 %3617  ;;  %v3435_v59 = vpack.c.bf16 %v2506_v55, %v2505_v38  ;;  %2535 = vrot.lane.b32.xlu0 %v2404_v35, %s3782_s9 }
 0xe32   : > { %v3620_v43 = vunpack.i.h.bf16 %v3618_v57  ;;  %v3619_v60 = vunpack.i.l.bf16 %v3618_v57 }
 0xe33   : > { %3436 = vmatprep.subr.bf16.mxu1 %v3435_v59  ;;  %2664 = vrot.lane.b32.xlu1 %v2652_v36, %s3783_s30 }
 0xe34   : > { %3340 = vmatmul.mubr.msk.f32.gmra.mrb[44].mxu0 %vm259_vm0, %v4211_v40  ;;  %3438 = vmatpush3.bf16.msra.mxu1 %v3435_v59  ;;  %v2507_v62 = vsel %vm2130_vm3, %v3619_v60, %v3620_v43  ;;  %v2508_v40 = vsel %vm2130_vm3, %v3624_v61, %v3625_v1  ;;  %vm2666_vm0 = vcmask 523264  }
 0xe35   : > { %3402 = vmatprep.mubr.msk.f32.mxu0 %vm3766_vm1, %v3767_v42  ;;  %v3628_v45 = vpop.permute.xlu1 %3627  ;;  %v3439_v63 = vpack.c.bf16 %v2508_v40, %v2507_v62  ;;  %vm4465_vm1 = vmpackc.low %vm2666_vm0, %vm2666_vm0 }
 0xe36   : > { %v3630_v0 = vunpack.i.h.bf16 %v3628_v45  ;;  %v3629_v51 = vunpack.i.l.bf16 %v3628_v45 }
 0xe37   : > { %3440 = vmatprep.subr.bf16.mxu1 %v3439_v63 }
 0xe38   : > { %3442 = vmatpush3.bf16.msra.mxu1 %v3439_v63  ;;  %v2509_v42 = vsel %vm2130_vm3, %v3629_v51, %v3630_v0 }
 0xe39   : > { %v3443_v13 = vpack.c.bf16 %v2510_v7, %v2509_v42  ;;  %v3638_v31 = vpop.permute.xlu1 %3637 }
 0xe3a   : > { %v3640_v15 = vunpack.i.h.bf16 %v3638_v31  ;;  %v3639_v16 = vunpack.i.l.bf16 %v3638_v31 }
 0xe3b   : > { %3444 = vmatprep.subr.bf16.mxu1 %v3443_v13 }
 0xe3c   : > { %3446 = vmatpush3.bf16.msra.mxu1 %v3443_v13  ;;  %v2511_v24 = vsel %vm2130_vm3, %v3639_v16, %v3640_v15 }
 0xe3d   : > { %v3648_v19 = vpop.permute.xlu1 %3647  ;;  %v3447_v28 = vpack.c.bf16 %v2512_v26, %v2511_v24 }
 0xe3e   : > { %v3650_v21 = vunpack.i.h.bf16 %v3648_v19  ;;  %v3649_v2 = vunpack.i.l.bf16 %v3648_v19 }
 0xe3f   : > { %3448 = vmatprep.subr.bf16.mxu1 %v3447_v28 }
 0xe40   : > { %3450 = vmatpush3.bf16.msra.mxu1 %v3447_v28  ;;  %v2513_v54 = vsel %vm2130_vm3, %v3649_v2, %v3650_v21  ;;  %v3784_v21 = vmov 33  }
 0xe41   : > { %v3658_v34 = vpop.permute.xlu1 %3657  ;;  %v3451_v52 = vpack.c.bf16 %v2514_v37, %v2513_v54  ;;  %3666 = vset.pattern.permute.xlu0 %v3784_v21 }
 0xe42   : > { %v3660_v10 = vunpack.i.h.bf16 %v3658_v34  ;;  %v3659_v4 = vunpack.i.l.bf16 %v3658_v34  ;;  %2656 = vperm.xlu0 %3666, %v2653_v20  }
 0xe43   : > { %3452 = vmatprep.subr.bf16.mxu1 %v3451_v52 }
 0xe44   : > { %v2515_v25 = vsel %vm2130_vm3, %v3659_v4, %v3660_v10  ;;  %3454 = vmatpush3.bf16.msra.mxu1 %v3451_v52 }
 0xe45   : > { %v3455_v30 = vpack.c.bf16 %v2516_v23, %v2515_v25  ;;  %v2342_v44 = vpop.permute.xlu1 %2341 }
 0xe46   : > { %v2345_v49 = vsel %vm2130_vm3, %v2342_v44, %v2344_v46 }
 0xe47   : > { %3456 = vmatprep.subr.bf16.mxu1 %v3455_v30 }
 0xe48   : > { %3458 = vmatpush3.bf16.msra.mxu1 %v3455_v30 }
 0xea1   : > { %v2534_v2 = vpop.permute.xlu1 %2533 }
 0xea3   : > { %v2536_v3 = vpop.permute.xlu0 %2535 }
 0xea4   : > { %v2537_v5 = vsel %vm2130_vm3, %v2534_v2, %v2536_v3 }
 0xef7   : > { %v2208_v29 = vpop.f32.mrb[36].mxu0 }
 0xef8   : > { %v3327_v39 = vpop.f32.mrb[37].mxu0  ;;  %v2217_v47 = vrot.slane %v2208_v29, %v3983_v56 }
 0xefb   : > { %v3332_v48 = vpop.f32.mrb[38].mxu0 }
 0xefc   : > { %v2298_v9 = vadd.f32 %v3332_v48, %v2217_v47  ;;  %v2292_v50 = vpop.f32.mrb[39].mxu0 }
 0xefd   : > { %v2293_v53 = vadd.f32 %v2292_v50, %v2217_v47 }
 0xefe   : > { %v2348_v38 = vadd.f32 %v2345_v49, %v2298_v9 }
 0xeff   : > { %v2347_v55 = vadd.f32 %v2345_v49, %v2293_v53  ;;  %v3335_v57 = vpop.f32.mrb[40].mxu0 }
 0xf00   : > { %v2308_v58 = vadd.f32 %v3335_v57, %v2217_v47  ;;  %v2302_v59 = vpop.f32.mrb[41].mxu0  ;;  %v2356_v61 = vmax.f32 %v2348_v38, 0.0  ;;  %v2665_v38 = vpop.permute.xlu1 %2664 }
 0xf01   : > { %v2355_v43 = vmax.f32 %v2347_v55, 0.0  ;;  %v2303_v60 = vadd.f32 %v2302_v59, %v2217_v47 }
 0xf02   : > { %v2350_v1 = vadd.f32 %v2345_v49, %v2308_v58 }
 0xf03   : > { %v2349_v62 = vadd.f32 %v2345_v49, %v2303_v60  ;;  %v3338_v40 = vpop.f32.mrb[42].mxu0  ;;  %3374 = vmatprep.mubr.f32.mxu1 %v2355_v43 }
 0xf04   : > { %v2318_v45 = vadd.f32 %v3338_v40, %v2217_v47  ;;  %v2312_v11 = vpop.f32.mrb[43].mxu0  ;;  %3375 = vmatmul.mubr.f32.vlgmr.msra.gmra.mrb[42].mxu1 %v2356_v61  ;;  %v2358_v51 = vmax.f32 %v2350_v1, 0.0 }
 0xf05   : > { %v2357_v63 = vmax.f32 %v2349_v62, 0.0  ;;  %v2313_v0 = vadd.f32 %v2312_v11, %v2217_v47 }
 0xf06   : > { %v2352_v12 = vadd.f32 %v2345_v49, %v2318_v45 }
 0xf07   : > { %v2351_v6 = vadd.f32 %v2345_v49, %v2313_v0  ;;  %v3341_v42 = vpop.f32.mrb[44].mxu0  ;;  %3377 = vmatprep.mubr.f32.mxu1 %v2357_v63 }
 0xf08   : > { %v2328_v7 = vadd.f32 %v3341_v42, %v2217_v47  ;;  %v2322_v13 = vpop.f32.mrb[45].mxu0  ;;  %3378 = vmatmul.mubr.f32.gmra.mrb[44].mxu1 %v2358_v51  ;;  %v2360_v15 = vmax.f32 %v2352_v12, 0.0 }
 0xf09   : > { %v2359_v31 = vmax.f32 %v2351_v6, 0.0  ;;  %v2323_v14 = vadd.f32 %v2322_v13, %v2217_v47 }
 0xf0a   : > { %v2354_v16 = vadd.f32 %v2345_v49, %v2328_v7 }
 0xf0b   : > { %v2353_v17 = vadd.f32 %v2345_v49, %v2323_v14  ;;  %3380 = vmatprep.mubr.f32.mxu1 %v2359_v31 }
 0xf0c   : > { %3381 = vmatmul.mubr.f32.gmra.mrb[46].mxu1 %v2360_v15  ;;  %v2362_v19 = vmax.f32 %v2354_v16, 0.0 }
 0xf0d   : > { %v2361_v18 = vmax.f32 %v2353_v17, 0.0 }
 0xf0f   : > { %3383 = vmatprep.mubr.f32.mxu1 %v2361_v18 }
 0xf10   : > { %3384 = vmatmul.mubr.f32.gmra.mrb[48].mxu1 %v2362_v19 }
 0xfd7   : > { %v3376_v24 = vpop.f32.mrb[42].mxu1 }
 0xfd8   : > { %v2611_v26 = vadd.f32 %v3376_v24, %v2537_v5  ;;  %v2605_v28 = vpop.f32.mrb[43].mxu1 }
 0xfd9   : > { %v2606_v34 = vadd.f32 %v2605_v28, %v2537_v5 }
 0xfda   : > { %v2645_v8 = vmax.f32 %v2611_v26, 0.0 }
 0xfdb   : > { %v2644_v54 = vmax.f32 %v2606_v34, 0.0  ;;  %v3379_v37 = vpop.f32.mrb[44].mxu1 }
 0xfdc   : > { %v2621_v10 = vadd.f32 %v3379_v37, %v2537_v5  ;;  %v2615_v4 = vpop.f32.mrb[45].mxu1 }
 0xfdd   : > { %v3460_v27 = vpack.c.bf16 %v2645_v8, %v2644_v54  ;;  %v2616_v52 = vadd.f32 %v2615_v4, %v2537_v5 }
 0xfde   : > { %v2647_v25 = vmax.f32 %v2621_v10, 0.0 }
 0xfdf   : > { %v2646_v23 = vmax.f32 %v2616_v52, 0.0  ;;  %v3382_v30 = vpop.f32.mrb[46].mxu1  ;;  %3462 = vmatpush3.bf16.xpose.msk.msra.mxu0 %vm4465_vm1, %v3460_v27 }
 0xfe0   : > { %v2631_v32 = vadd.f32 %v3382_v30, %v2537_v5  ;;  %v2625_v33 = vpop.f32.mrb[47].mxu1  ;;  %3463 = vmatprep.subr.bf16.mxu0 %v3765_v41 }
 0xfe1   : > { %v3464_v35 = vpack.c.bf16 %v2647_v25, %v2646_v23  ;;  %v2626_v36 = vadd.f32 %v2625_v33, %v2537_v5 }
 0xfe2   : > { %v2649_v29 = vmax.f32 %v2631_v32, 0.0 }
 0xfe3   : > { %v2648_v44 = vmax.f32 %v2626_v36, 0.0  ;;  %v3385_v39 = vpop.f32.mrb[48].mxu1 }
 0xfe4   : > { %v2641_v46 = vadd.f32 %v3385_v39, %v2537_v5  ;;  %v2635_v47 = vpop.f32.mrb[49].mxu1 }
 0xfe5   : > { %v3468_v48 = vpack.c.bf16 %v2649_v29, %v2648_v44  ;;  %v2636_v49 = vadd.f32 %v2635_v47, %v2537_v5 }
 0xfe6   : > { %v2651_v9 = vmax.f32 %v2641_v46, 0.0 }
 0xfe7   : > { %v2650_v50 = vmax.f32 %v2636_v49, 0.0  ;;  %3466 = vmatpush3.bf16.xpose.msk.msra.mxu0 %vm4465_vm1, %v3464_v35 }
 0xfe8   : > { %3467 = vmatprep.subr.bf16.mxu0 %v3765_v41 }
 0xfe9   : > { %v3472_v53 = vpack.c.bf16 %v2651_v9, %v2650_v50 }
 0xfef   : > { %3470 = vmatpush3.bf16.xpose.msk.msra.mxu0 %vm4465_vm1, %v3468_v48 }
 0xff0   : > { %3471 = vmatprep.subr.bf16.mxu0 %v3765_v41 }
 0xff7   : > { %3474 = vmatpush3.bf16.xpose.msk.msra.mxu0 %vm4465_vm1, %v3472_v53 }
 0xffe   : > { %3403 = vmatmul.mubr.msk.f32.vlgmr.msra.gmra.mrb[46].mxu0 %vm2666_vm0, %v2665_v38 }
 0xfff   : > { %3680 = shalt.err (!%p3677_p3)
}
0x1000   : > { %s3681_s25 = scalar_lea.hbm %s4486_s13, 128  ;;  %s3685_s9 = scalar_lea.hbm %s4560_s5, 256 }
0x1001   : > { %p3682_p4 = scmp.ne.s32.totalorder %s4486_s13, %s3681_s25  ;;  %p3686_p9 = scmp.lt.u32.totalorder %s4486_s13, %s4560_s5 }
0x1002   : > { %p3687_p10 = scmp.lt.u32.totalorder %s3685_s9, %s3681_s25  ;;  %p3689_p12 = scmp.lt.u32.totalorder %s3681_s25, %s4486_s13 }
0x1003   : > { %p3683_p7 = pnand %p3682_p4, %p3855_p5 }
0x1004   : > { %p3688_p11 = por %p3687_p10, %p3686_p9 }
0x1005   : > { %p3684_p8 = pneg %p3683_p7 }
0x1006   : > { %p3690_p13 = por %p3689_p12, %p3688_p11 }
0x1008   : > { %p3691_p0 = pnand %p3690_p13, %p3684_p8 }
0x100a   : > { %3694 = shalt.err (!%p3691_p0)
}
0x100b   : > { %3476 = dma.vmem_to_hbm [thread:$0]  (%p3855_p5), %s2804_s10, 128, %s4486_s13, %s2774_s7   ;;  %v2657_v41 = vpop.permute.xlu0 %2656  ;;  %vm2763_vm4 = vcmask 516096  }
0x100c   : > { %v2662_v55 = vrot.slane %v2657_v41, %v3983_v56  ;;  %s3017_s11 = sshll.u32 %s3838_s22, 4  ;;  %s220_s12 = scalar_lea.vmem [#allocation2], %s4148_s17 }
0x100d   : > { %s2787_s14 = sshll.u32 %s220_s12, 4  ;;  %s4512_s16 = scalar_lea.hbm %s4558_s3, %s3017_s11  ;;  %s4514_s14 = int_to_ptr.vmem [resolvable:$true] %s2787_s14 }
0x100e   : > { %s2766_s10 = scalar_lea.sflag [#allocation3], %s4148_s17  ;;  %s3695_s13 = scalar_lea.vmem %s4514_s14, 16 }
0x100f   : > { %p3696_p1 = scmp.ne.s32.totalorder %s4514_s14, %s3695_s13  ;;  %s3786_s22 = smov [#allocation2]  }
0x1010   : > { %s3699_s7 = sshll.u32 %s3786_s22, 4  ;;  %s3700_s7 = int_to_ptr.vmem [resolvable:$false] %s3699_s7 }
0x1011   : > { %p3697_p2 = pnand %p3696_p1, %p3855_p5  ;;  %s3701_s25 = scalar_lea.vmem %s3700_s7, 32 }
0x1012   : > { %p3702_p4 = scmp.lt.s32.totalorder %s4514_s14, %s3700_s7  ;;  %p3703_p7 = scmp.lt.s32.totalorder %s3701_s25, %s3695_s13 }
0x1013   : > { %p3698_p3 = pneg %p3697_p2 }
0x1014   : > { %p3704_p8 = por %p3703_p7, %p3702_p4 }
0x1016   : > { %p3705_p9 = pnand %p3704_p8, %p3698_p3 }
0x10d1   : > { %v2759_v57 = vpop.f32.mrb[46].mxu0 }
0x10d2   : > { %v2760_v58 = vadd.f32 %v2759_v57, %v2662_v55  ;;  %v3404_v59 = vpop.f32.mrb[47].mxu0 }
0x10d4   : > { %2764 = vst.msk [vmem:[%s220_s12] sm:$0x1] %vm2763_vm4, %v2760_v58 }
0x10d5   : > { %3708 = shalt.err (!%p3705_p9)
}
0x10d6   : > { %s3709_s17 = scalar_lea.hbm %s4512_s16, 16  ;;  %s3713_s9 = scalar_lea.hbm %s4558_s3, 32 }
0x10d7   : > { %p3710_p10 = scmp.ne.s32.totalorder %s4512_s16, %s3709_s17  ;;  %p3714_p13 = scmp.lt.u32.totalorder %s4512_s16, %s4558_s3 }
0x10d8   : > { %p3715_p0 = scmp.lt.u32.totalorder %s3713_s9, %s3709_s17  ;;  %p3717_p2 = scmp.lt.u32.totalorder %s3709_s17, %s4512_s16 }
0x10d9   : > { %p3711_p11 = pnand %p3710_p10, %p3855_p5 }
0x10da   : > { %p3716_p1 = por %p3715_p0, %p3714_p13 }
0x10db   : > { %p3712_p12 = pneg %p3711_p11 }
0x10dc   : > { %p3718_p3 = por %p3717_p2, %p3716_p1 }
0x10de   : > { %p3719_p4 = pnand %p3718_p3, %p3712_p12 }
0x10e0   : > { %3722 = shalt.err (!%p3719_p4)
}
0x10e1   : > { %3475 = dma.vmem_to_hbm [thread:$0]  (%p3855_p5), %s4514_s14, 16, %s4512_s16, %s2766_s10  }
0x10e2 PF: > { %p3486_p7 = scmp.ge.s32.totalorder %s3761_s21, 2  ;;  %s2815_s11 = sand.u32 1, %s3749_s18  }
0x10e3   : > { %s2816_s12 = scalar_lea.sflag [#allocation3], %s2815_s11 }
0x10e4   : > { %p3480_p8 = pnand %p3486_p7, %p3859_p6 }
0x10e6   : > { %3740 = dma.done.wait (!%p3480_p8), %s2816_s12, 16  }
0x10e7   : > { %3742 = vsyncadd (!%p3480_p8), %s2816_s12, 4294967280  ;;  %s2831_s23 = scalar_lea.sflag [#allocation5], %s2815_s11 }
0x10e8   : > { %3744 = dma.done.wait (!%p3480_p8), %s2831_s23, 128  }
0x10e9   : > { %3746 = vsyncadd (!%p3480_p8), %s2831_s23, 4294967168  ;;  %p19_p5 = scmp.ge.s32.totalorder %s3842_s24, 4   ;;  %s4565_s18 = smov %s3753_s19 }
0x10ea   : > { %s4566_s19 = smov %s3757_s20  ;;  %s4567_s20 = smov %s3853_s27 }
0x10eb   : > { %s4568_s21 = smov %s3842_s24  ;;  %21 = sbr.rel (!%p19_p5) target bundleno = 5 (0x5), region = 96 }
0x10f2   :  { %2836 = vsyncpa [#allocation3], 1 }
0x10f3   :  { %2838 = vsyncpa [#allocation3 + $0x1], 1 }
0x10f4   :  { %2839 = vsyncpa [#allocation5], 1 }
0x10f5   :  { %2841 = vsyncpa [#allocation5 + $0x1], 1 }

</bundles_post_ra>
